<compile_context>
chip_gen: v7x
topology: tpu7x:2x2x1
jax: 0.10.0
libtpu: 0.0.40
codegen_flags: <defaults>
</compile_context>

<pallas_src>
import functools

import jax
import jax.numpy as jnp
from jax import lax
from jax.experimental import pallas as pl
from jax.experimental.pallas import tpu as pltpu

K = 5            # conv kernel size
PAD = K // 2     # "same" padding
LANE = 128       # TPU lane width


def _round_up(x, m):
    return (x + m - 1) // m * m


def _attention_kernel(x_ref, w1_ref, b1_ref, w2_ref, b2_ref, mask_ref, o_ref,
                      p_ref, x2_ref, *, cin, wp, n_lanes, taps_per_group,
                      shift, halo):
    """One image per grid step.

    x_ref    : (1, Cin, N + halo_lanes)  zero-padded input, flat padded coords
    w1_ref   : (Cin,  Kcols)   conv1 weights * bn1 scale, tap-major, zero-pad cols
    w2_ref   : (Cout, Kcols)   conv2 weights * bn2 scale, tap-major, zero-pad cols
    b1/b2    : (C, 1)          folded BatchNorm bias
    mask_ref : (1, N)          1.0 at valid padded-grid positions q = i*Wp + j
    o_ref    : (1, Cout, N)    output (NCHW-flat, padded-coordinate lanes)
    p_ref    : VMEM (Kcols, N) im2col patch matrix (reused by both convs)
    x2_ref   : VMEM (Cin, shift + N + halo_lanes) re-padded conv2 input
    """
    N = n_lanes
    n_taps = K * K
    rows_per_group = taps_per_group * cin
    n_groups = p_ref.shape[0] // rows_per_group
    pdt = p_ref.dtype

    def tap_off(tap):
        return (tap // K) * wp + (tap % K)

    def build_patches(read_tap):
        # Sublane-aligned im2col: each store writes a full row group
        # (8 rows for f32, 16 rows for bf16) -> unmasked full-tile stores.
        for g in range(n_groups):
            first = g * taps_per_group
            parts = [read_tap(first + t)
                     for t in range(taps_per_group) if first + t < n_taps]
            pad_rows = rows_per_group - len(parts) * cin
            if pad_rows:
                parts.append(jnp.zeros((pad_rows, N), pdt))
            blk = parts[0] if len(parts) == 1 else jnp.concatenate(parts, axis=0)
            p_ref[g * rows_per_group:(g + 1) * rows_per_group, :] = blk

    # ---- conv1: one MXU matmul over the im2col patch matrix -----------------
    build_patches(lambda tap: x_ref[0, :, tap_off(tap):tap_off(tap) + N])
    y1 = jnp.dot(w1_ref[...], p_ref[...], preferred_element_type=jnp.float32)

    # bn1 (scale folded into w1) + mp1(identity) + relu1, then zero invalid
    # lanes: the mask multiply also provides conv2's zero padding.
    y1 = jnp.maximum(y1 + b1_ref[...], 0.0) * mask_ref[...]
    # TODO(synk): Dropout(0.2) is identity in eval mode; training-mode dropout
    # would mask here with pltpu.prng_random_bits.

    # ---- re-pad for conv2: lane-aligned placement of y1 in the x2 scratch ---
    x2_ref[:, :shift] = jnp.zeros((cin, shift), pdt)
    x2_ref[:, shift + N:] = jnp.zeros((cin, x2_ref.shape[1] - shift - N), pdt)
    x2_ref[:, shift:shift + N] = y1.astype(pdt)

    # ---- conv2 ----------------------------------------------------------------
    base = shift - halo
    build_patches(lambda tap: x2_ref[:, base + tap_off(tap):
                                        base + tap_off(tap) + N])
    y2 = jnp.dot(w2_ref[...], p_ref[...], preferred_element_type=jnp.float32)

    # bn2 (scale folded) + mp2(identity) + relu2. No mask: the wrapper's final
    # slice discards all invalid lanes.
    o_ref[0] = jnp.maximum(y2 + b2_ref[...], 0.0).astype(o_ref.dtype)


def attention_model_forward(x_nchw, params, patch_dtype=jnp.float32):
    """x_nchw: (B, C, H, W) float32.  Returns (B, Cout, H, W) float32.

    patch_dtype=jnp.bfloat16 halves im2col traffic / P footprint (recommended
    on v6e/v7x); keep float32 on v5e.
    """
    w1, w2 = params["w1"], params["w2"]                    # OIHW, like PyTorch
    s1, b1 = params["scale1"], params["bias1"]
    s2, b2 = params["scale2"], params["bias2"]

    B, Cin, H, W = x_nchw.shape
    Cout = w2.shape[0]
    Hp, Wp = H + 2 * PAD, W + 2 * PAD
    Lraw = Hp * Wp
    N = _round_up(Lraw, LANE)                    # lanes per image / grid step
    halo = PAD * Wp + PAD                        # "same" re-pad shift for conv2
    halo_lanes = _round_up((K - 1) * Wp + (K - 1), LANE)   # tap over-read room
    shift = _round_up(halo, LANE)                # lane-aligned y1 slot in x2
    Npad_in = N + halo_lanes
    x2_lanes = shift + N + halo_lanes

    # Static geometry checks — VMEM refs have NO runtime bounds check.
    assert halo_lanes >= (K - 1) * Wp + (K - 1)
    assert shift >= halo
    assert (H - 1) * Wp + (W - 1) + (K - 1) * Wp + (K - 1) < Lraw

    # Sublane-aligned tap grouping for the im2col stores.
    itemsize = jnp.dtype(patch_dtype).itemsize
    sub_tile = 8 * (4 // itemsize)               # 8 rows f32, 16 rows bf16
    tg = sub_tile // Cin if (Cin <= sub_tile and sub_tile % Cin == 0) else 1
    n_groups = -(-(K * K) // tg)
    Kcols = n_groups * tg * Cin                  # 104 (f32) / 112 (bf16) @ Cin=4

    # ---- glue (minimal: pad -> reshape -> pad, no transposes; bb = 1) -------
    xp = jnp.pad(x_nchw, ((0, 0), (0, 0), (PAD, PAD), (PAD, PAD)))   # (B,C,Hp,Wp)
    xb = jnp.pad(xp.reshape(B, Cin, Lraw),
                 ((0, 0), (0, 0), (0, Npad_in - Lraw))).astype(patch_dtype)

    # Validity mask of the padded-coordinate grid (q = i*Wp + j, i < H, j < W).
    q = jnp.arange(N)
    mask = ((q % Wp < W) & (q // Wp < H)).astype(jnp.float32).reshape(1, N)

    # Conv weights as (Cout, taps*Cin), tap-major columns; BN scale folded in;
    # zero-padded columns match the padded P rows (pad rows * 0 contribute 0).
    w1m = jnp.transpose(w1, (0, 2, 3, 1)).reshape(Cin, K * K * Cin) * s1[:, None]
    w2m = jnp.transpose(w2, (0, 2, 3, 1)).reshape(Cout, K * K * Cin) * s2[:, None]
    w1m = jnp.pad(w1m, ((0, 0), (0, Kcols - K * K * Cin))).astype(patch_dtype)
    w2m = jnp.pad(w2m, ((0, 0), (0, Kcols - K * K * Cin))).astype(patch_dtype)
    b1c = b1.reshape(Cin, 1).astype(jnp.float32)
    b2c = b2.reshape(Cout, 1).astype(jnp.float32)

    # VMEM budget: the im2col scratch dominates; keep well under v7x's 64 MiB.
    est = (Kcols * N * itemsize + Cin * x2_lanes * itemsize       # scratches
           + 2 * Cin * Npad_in * itemsize + 2 * Cout * N * 4      # dbl-buffered io
           + (Cin + Cout) * (Kcols * itemsize + 4) + N * 4)
    assert est < 44 * 2 ** 20, (
        "per-step VMEM footprint too large for v7x; add spatial tiling")
    vmem_limit = int(min(48 * 2 ** 20, max(24 * 2 ** 20, 2 * est)))

    kernel = functools.partial(_attention_kernel, cin=Cin, wp=Wp, n_lanes=N,
                               taps_per_group=tg, shift=shift, halo=halo)

    out = pl.pallas_call(
        kernel,
        out_shape=jax.ShapeDtypeStruct((B, Cout, N), jnp.float32),
        grid_spec=pltpu.PrefetchScalarGridSpec(
            num_scalar_prefetch=0,
            # One image per step: >=4 pipelined steps once B>=4; keep B even on
            # v7x so the "parallel" axis feeds both TensorCores.
            grid=(B,),
            in_specs=[
                pl.BlockSpec((1, Cin, Npad_in), lambda b: (b, 0, 0)),
                pl.BlockSpec((Cin, Kcols), lambda b: (0, 0)),
                pl.BlockSpec((Cin, 1), lambda b: (0, 0)),
                pl.BlockSpec((Cout, Kcols), lambda b: (0, 0)),
                pl.BlockSpec((Cout, 1), lambda b: (0, 0)),
                pl.BlockSpec((1, N), lambda b: (0, 0)),
            ],
            out_specs=pl.BlockSpec((1, Cout, N), lambda b: (b, 0, 0)),
            scratch_shapes=[
                pltpu.VMEM((Kcols, N), patch_dtype),       # im2col patch matrix
                pltpu.VMEM((Cin, x2_lanes), patch_dtype),  # re-padded conv2 input
            ],
        ),
        compiler_params=pltpu.CompilerParams(
            dimension_semantics=("parallel",),
            vmem_limit_bytes=vmem_limit),
    )(xb, w1m, b1c, w2m, b2c, mask)

    # Data is already NCHW-flat in padded-grid coordinates; slice off padding.
    out = out[:, :, :H * Wp].reshape(B, Cout, H, Wp)[:, :, :, :W]
    return out


def make_params(key, in_chans, out_chans):
    """Deterministic params matching the module (conv OIHW, BN folded, eval)."""
    assert in_chans == out_chans, "BatchNorm2d(in_chans) after conv2 needs in==out"
    ks = jax.random.split(key, 8)
    eps = 1e-5

    w1 = 0.1 * jax.random.normal(ks[0], (in_chans, in_chans, K, K), jnp.float32)
    w2 = 0.1 * jax.random.normal(ks[1], (out_chans, in_chans, K, K), jnp.float32)

    g1 = 1.0 + 0.1 * jax.random.normal(ks[2], (in_chans,), jnp.float32)
    be1 = 0.1 * jax.random.normal(ks[3], (in_chans,), jnp.float32)
    rm1 = 0.05 * jax.random.normal(ks[4], (in_chans,), jnp.float32)
    rv1 = jnp.abs(1.0 + 0.1 * jax.random.normal(ks[5], (in_chans,), jnp.float32))
    s1 = g1 / jnp.sqrt(rv1 + eps)
    b1 = be1 - rm1 * s1

    g2 = 1.0 + 0.1 * jax.random.normal(ks[6], (out_chans,), jnp.float32)
    be2 = 0.1 * jax.random.normal(ks[7], (out_chans,), jnp.float32)
    rm2 = jnp.zeros((out_chans,), jnp.float32)
    rv2 = jnp.ones((out_chans,), jnp.float32)
    s2 = g2 / jnp.sqrt(rv2 + eps)
    b2 = be2 - rm2 * s2

    return {"w1": w1, "scale1": s1, "bias1": b1,
            "w2": w2, "scale2": s2, "bias2": b2}


def _reference(x_nchw, params):
    """Plain-JAX reference (lax.conv_general_dilated) for validation."""
    dn = ("NCHW", "OIHW", "NCHW")
    y = lax.conv_general_dilated(x_nchw, params["w1"], (1, 1), "SAME",
                                 dimension_numbers=dn,
                                 precision=lax.Precision.HIGHEST)
    y = y * params["scale1"][None, :, None, None] + params["bias1"][None, :, None, None]
    y = jnp.maximum(y, 0.0)
    y = lax.conv_general_dilated(y, params["w2"], (1, 1), "SAME",
                                 dimension_numbers=dn,
                                 precision=lax.Precision.HIGHEST)
    y = y * params["scale2"][None, :, None, None] + params["bias2"][None, :, None, None]
    return jnp.maximum(y, 0.0)


if __name__ == "__main__":
    B, C, H, W = 2, 4, 16, 16          # in_chans == out_chans == 4
    key = jax.random.PRNGKey(0)
    kx, kp = jax.random.split(key)
    x = jax.random.normal(kx, (B, C, H, W), jnp.float32)
    params = make_params(kp, C, C)

    ref = jax.block_until_ready(_reference(x, params))

    # Default float32 patch path (v5e-safe); strict tolerance.
    out = jax.block_until_ready(attention_model_forward(x, params))
    assert out.shape == (B, C, H, W)
    err = float(jnp.max(jnp.abs(out - ref)))
    assert err < 2e-2, f"f32 mismatch vs plain-JAX reference: max abs err {err}"

    # bf16 patch-matrix path (v6e/v7x traffic/VMEM optimization); loose tolerance.
    out_bf = jax.block_until_ready(
        attention_model_forward(x, params, patch_dtype=jnp.bfloat16))
    err_bf = float(jnp.max(jnp.abs(out_bf - ref)))
    assert err_bf < 3e-1, f"bf16 mismatch vs plain-JAX reference: max abs err {err_bf}"

    print("KERNEL_OK")
</pallas_src>

<mosaic_0001>
module attributes {stable_mosaic.version = 11 : i64} {
  func.func @_attention_kernel(%arg0: i32, %arg1: memref<1x4x640xf32, #tpu.memory_space<vmem>>, %arg2: memref<4x104xf32, #tpu.memory_space<vmem>>, %arg3: memref<4x1xf32, #tpu.memory_space<vmem>>, %arg4: memref<4x104xf32, #tpu.memory_space<vmem>>, %arg5: memref<4x1xf32, #tpu.memory_space<vmem>>, %arg6: memref<1x512xf32, #tpu.memory_space<vmem>>, %arg7: memref<1x4x512xf32, #tpu.memory_space<vmem>>, %arg8: memref<104x512xf32, #tpu.memory_space<vmem>>, %arg9: memref<4x768xf32, #tpu.memory_space<vmem>>) attributes {dimension_semantics = [#tpu.dimension_semantics<parallel>], iteration_bounds = array<i64: 2>, scalar_prefetch = 0 : i64, scratch_operands = 2 : i64, tpu.core_type = #tpu.core_type<tc>, window_params = [{transform_indices = @transform_0, window_bounds = array<i64: 1, 4, 640>}, {pipeline_mode = #tpu.pipeline_mode<synchronous>, transform_indices = @transform_1, window_bounds = array<i64: 4, 104>}, {pipeline_mode = #tpu.pipeline_mode<synchronous>, transform_indices = @transform_2, window_bounds = array<i64: 4, 1>}, {pipeline_mode = #tpu.pipeline_mode<synchronous>, transform_indices = @transform_3, window_bounds = array<i64: 4, 104>}, {pipeline_mode = #tpu.pipeline_mode<synchronous>, transform_indices = @transform_4, window_bounds = array<i64: 4, 1>}, {pipeline_mode = #tpu.pipeline_mode<synchronous>, transform_indices = @transform_5, window_bounds = array<i64: 1, 512>}, {transform_indices = @transform_6, window_bounds = array<i64: 1, 4, 512>}]} {
    %c0 = arith.constant 0 : index
    %c0_0 = arith.constant 0 : index
    %c0_1 = arith.constant 0 : index
    %0 = vector.load %arg1[%c0, %c0_0, %c0_1] : memref<1x4x640xf32, #tpu.memory_space<vmem>>, vector<1x4x512xf32>
    %1 = vector.shape_cast %0 : vector<1x4x512xf32> to vector<4x512xf32>
    %c0_2 = arith.constant 0 : index
    %c0_3 = arith.constant 0 : index
    %c1 = arith.constant 1 : index
    %2 = vector.load %arg1[%c0_2, %c0_3, %c1] : memref<1x4x640xf32, #tpu.memory_space<vmem>>, vector<1x4x512xf32>
    %3 = vector.shape_cast %2 : vector<1x4x512xf32> to vector<4x512xf32>
    %4 = tpu.concatenate %1, %3 in 0 : vector<4x512xf32>, vector<4x512xf32> -> vector<8x512xf32>
    %c0_4 = arith.constant 0 : index
    %c0_5 = arith.constant 0 : index
    %5 = vector.load %arg8[%c0_4, %c0_5] : memref<104x512xf32, #tpu.memory_space<vmem>>, vector<8x512xf32>
    tpu.vector_store %arg8[%c0_4, %c0_5], %4 {strides = array<i32>} : memref<104x512xf32, #tpu.memory_space<vmem>>, vector<8x512xf32>,
    %c0_6 = arith.constant 0 : index
    %c0_7 = arith.constant 0 : index
    %c2 = arith.constant 2 : index
    %6 = vector.load %arg1[%c0_6, %c0_7, %c2] : memref<1x4x640xf32, #tpu.memory_space<vmem>>, vector<1x4x512xf32>
    %7 = vector.shape_cast %6 : vector<1x4x512xf32> to vector<4x512xf32>
    %c0_8 = arith.constant 0 : index
    %c0_9 = arith.constant 0 : index
    %c3 = arith.constant 3 : index
    %8 = vector.load %arg1[%c0_8, %c0_9, %c3] : memref<1x4x640xf32, #tpu.memory_space<vmem>>, vector<1x4x512xf32>
    %9 = vector.shape_cast %8 : vector<1x4x512xf32> to vector<4x512xf32>
    %10 = tpu.concatenate %7, %9 in 0 : vector<4x512xf32>, vector<4x512xf32> -> vector<8x512xf32>
    %c8 = arith.constant 8 : index
    %c0_10 = arith.constant 0 : index
    %11 = vector.load %arg8[%c8, %c0_10] : memref<104x512xf32, #tpu.memory_space<vmem>>, vector<8x512xf32>
    tpu.vector_store %arg8[%c8, %c0_10], %10 {strides = array<i32>} : memref<104x512xf32, #tpu.memory_space<vmem>>, vector<8x512xf32>,
    %c0_11 = arith.constant 0 : index
    %c0_12 = arith.constant 0 : index
    %c4 = arith.constant 4 : index
    %12 = vector.load %arg1[%c0_11, %c0_12, %c4] : memref<1x4x640xf32, #tpu.memory_space<vmem>>, vector<1x4x512xf32>
    %13 = vector.shape_cast %12 : vector<1x4x512xf32> to vector<4x512xf32>
    %c0_13 = arith.constant 0 : index
    %c0_14 = arith.constant 0 : index
    %c20 = arith.constant 20 : index
    %14 = vector.load %arg1[%c0_13, %c0_14, %c20] : memref<1x4x640xf32, #tpu.memory_space<vmem>>, vector<1x4x512xf32>
    %15 = vector.shape_cast %14 : vector<1x4x512xf32> to vector<4x512xf32>
    %16 = tpu.concatenate %13, %15 in 0 : vector<4x512xf32>, vector<4x512xf32> -> vector<8x512xf32>
    %c16 = arith.constant 16 : index
    %c0_15 = arith.constant 0 : index
    %17 = vector.load %arg8[%c16, %c0_15] : memref<104x512xf32, #tpu.memory_space<vmem>>, vector<8x512xf32>
    tpu.vector_store %arg8[%c16, %c0_15], %16 {strides = array<i32>} : memref<104x512xf32, #tpu.memory_space<vmem>>, vector<8x512xf32>,
    %c0_16 = arith.constant 0 : index
    %c0_17 = arith.constant 0 : index
    %c21 = arith.constant 21 : index
    %18 = vector.load %arg1[%c0_16, %c0_17, %c21] : memref<1x4x640xf32, #tpu.memory_space<vmem>>, vector<1x4x512xf32>
    %19 = vector.shape_cast %18 : vector<1x4x512xf32> to vector<4x512xf32>
    %c0_18 = arith.constant 0 : index
    %c0_19 = arith.constant 0 : index
    %c22 = arith.constant 22 : index
    %20 = vector.load %arg1[%c0_18, %c0_19, %c22] : memref<1x4x640xf32, #tpu.memory_space<vmem>>, vector<1x4x512xf32>
    %21 = vector.shape_cast %20 : vector<1x4x512xf32> to vector<4x512xf32>
    %22 = tpu.concatenate %19, %21 in 0 : vector<4x512xf32>, vector<4x512xf32> -> vector<8x512xf32>
    %c24 = arith.constant 24 : index
    %c0_20 = arith.constant 0 : index
    %23 = vector.load %arg8[%c24, %c0_20] : memref<104x512xf32, #tpu.memory_space<vmem>>, vector<8x512xf32>
    tpu.vector_store %arg8[%c24, %c0_20], %22 {strides = array<i32>} : memref<104x512xf32, #tpu.memory_space<vmem>>, vector<8x512xf32>,
    %c0_21 = arith.constant 0 : index
    %c0_22 = arith.constant 0 : index
    %c23 = arith.constant 23 : index
    %24 = vector.load %arg1[%c0_21, %c0_22, %c23] : memref<1x4x640xf32, #tpu.memory_space<vmem>>, vector<1x4x512xf32>
    %25 = vector.shape_cast %24 : vector<1x4x512xf32> to vector<4x512xf32>
    %c0_23 = arith.constant 0 : index
    %c0_24 = arith.constant 0 : index
    %c24_25 = arith.constant 24 : index
    %26 = vector.load %arg1[%c0_23, %c0_24, %c24_25] : memref<1x4x640xf32, #tpu.memory_space<vmem>>, vector<1x4x512xf32>
    %27 = vector.shape_cast %26 : vector<1x4x512xf32> to vector<4x512xf32>
    %28 = tpu.concatenate %25, %27 in 0 : vector<4x512xf32>, vector<4x512xf32> -> vector<8x512xf32>
    %c32 = arith.constant 32 : index
    %c0_26 = arith.constant 0 : index
    %29 = vector.load %arg8[%c32, %c0_26] : memref<104x512xf32, #tpu.memory_space<vmem>>, vector<8x512xf32>
    tpu.vector_store %arg8[%c32, %c0_26], %28 {strides = array<i32>} : memref<104x512xf32, #tpu.memory_space<vmem>>, vector<8x512xf32>,
    %c0_27 = arith.constant 0 : index
    %c0_28 = arith.constant 0 : index
    %c40 = arith.constant 40 : index
    %30 = vector.load %arg1[%c0_27, %c0_28, %c40] : memref<1x4x640xf32, #tpu.memory_space<vmem>>, vector<1x4x512xf32>
    %31 = vector.shape_cast %30 : vector<1x4x512xf32> to vector<4x512xf32>
    %c0_29 = arith.constant 0 : index
    %c0_30 = arith.constant 0 : index
    %c41 = arith.constant 41 : index
    %32 = vector.load %arg1[%c0_29, %c0_30, %c41] : memref<1x4x640xf32, #tpu.memory_space<vmem>>, vector<1x4x512xf32>
    %33 = vector.shape_cast %32 : vector<1x4x512xf32> to vector<4x512xf32>
    %34 = tpu.concatenate %31, %33 in 0 : vector<4x512xf32>, vector<4x512xf32> -> vector<8x512xf32>
    %c40_31 = arith.constant 40 : index
    %c0_32 = arith.constant 0 : index
    %35 = vector.load %arg8[%c40_31, %c0_32] : memref<104x512xf32, #tpu.memory_space<vmem>>, vector<8x512xf32>
    tpu.vector_store %arg8[%c40_31, %c0_32], %34 {strides = array<i32>} : memref<104x512xf32, #tpu.memory_space<vmem>>, vector<8x512xf32>,
    %c0_33 = arith.constant 0 : index
    %c0_34 = arith.constant 0 : index
    %c42 = arith.constant 42 : index
    %36 = vector.load %arg1[%c0_33, %c0_34, %c42] : memref<1x4x640xf32, #tpu.memory_space<vmem>>, vector<1x4x512xf32>
    %37 = vector.shape_cast %36 : vector<1x4x512xf32> to vector<4x512xf32>
    %c0_35 = arith.constant 0 : index
    %c0_36 = arith.constant 0 : index
    %c43 = arith.constant 43 : index
    %38 = vector.load %arg1[%c0_35, %c0_36, %c43] : memref<1x4x640xf32, #tpu.memory_space<vmem>>, vector<1x4x512xf32>
    %39 = vector.shape_cast %38 : vector<1x4x512xf32> to vector<4x512xf32>
    %40 = tpu.concatenate %37, %39 in 0 : vector<4x512xf32>, vector<4x512xf32> -> vector<8x512xf32>
    %c48 = arith.constant 48 : index
    %c0_37 = arith.constant 0 : index
    %41 = vector.load %arg8[%c48, %c0_37] : memref<104x512xf32, #tpu.memory_space<vmem>>, vector<8x512xf32>
    tpu.vector_store %arg8[%c48, %c0_37], %40 {strides = array<i32>} : memref<104x512xf32, #tpu.memory_space<vmem>>, vector<8x512xf32>,
    %c0_38 = arith.constant 0 : index
    %c0_39 = arith.constant 0 : index
    %c44 = arith.constant 44 : index
    %42 = vector.load %arg1[%c0_38, %c0_39, %c44] : memref<1x4x640xf32, #tpu.memory_space<vmem>>, vector<1x4x512xf32>
    %43 = vector.shape_cast %42 : vector<1x4x512xf32> to vector<4x512xf32>
    %c0_40 = arith.constant 0 : index
    %c0_41 = arith.constant 0 : index
    %c60 = arith.constant 60 : index
    %44 = vector.load %arg1[%c0_40, %c0_41, %c60] : memref<1x4x640xf32, #tpu.memory_space<vmem>>, vector<1x4x512xf32>
    %45 = vector.shape_cast %44 : vector<1x4x512xf32> to vector<4x512xf32>
    %46 = tpu.concatenate %43, %45 in 0 : vector<4x512xf32>, vector<4x512xf32> -> vector<8x512xf32>
    %c56 = arith.constant 56 : index
    %c0_42 = arith.constant 0 : index
    %47 = vector.load %arg8[%c56, %c0_42] : memref<104x512xf32, #tpu.memory_space<vmem>>, vector<8x512xf32>
    tpu.vector_store %arg8[%c56, %c0_42], %46 {strides = array<i32>} : memref<104x512xf32, #tpu.memory_space<vmem>>, vector<8x512xf32>,
    %c0_43 = arith.constant 0 : index
    %c0_44 = arith.constant 0 : index
    %c61 = arith.constant 61 : index
    %48 = vector.load %arg1[%c0_43, %c0_44, %c61] : memref<1x4x640xf32, #tpu.memory_space<vmem>>, vector<1x4x512xf32>
    %49 = vector.shape_cast %48 : vector<1x4x512xf32> to vector<4x512xf32>
    %c0_45 = arith.constant 0 : index
    %c0_46 = arith.constant 0 : index
    %c62 = arith.constant 62 : index
    %50 = vector.load %arg1[%c0_45, %c0_46, %c62] : memref<1x4x640xf32, #tpu.memory_space<vmem>>, vector<1x4x512xf32>
    %51 = vector.shape_cast %50 : vector<1x4x512xf32> to vector<4x512xf32>
    %52 = tpu.concatenate %49, %51 in 0 : vector<4x512xf32>, vector<4x512xf32> -> vector<8x512xf32>
    %c64 = arith.constant 64 : index
    %c0_47 = arith.constant 0 : index
    %53 = vector.load %arg8[%c64, %c0_47] : memref<104x512xf32, #tpu.memory_space<vmem>>, vector<8x512xf32>
    tpu.vector_store %arg8[%c64, %c0_47], %52 {strides = array<i32>} : memref<104x512xf32, #tpu.memory_space<vmem>>, vector<8x512xf32>,
    %c0_48 = arith.constant 0 : index
    %c0_49 = arith.constant 0 : index
    %c63 = arith.constant 63 : index
    %54 = vector.load %arg1[%c0_48, %c0_49, %c63] : memref<1x4x640xf32, #tpu.memory_space<vmem>>, vector<1x4x512xf32>
    %55 = vector.shape_cast %54 : vector<1x4x512xf32> to vector<4x512xf32>
    %c0_50 = arith.constant 0 : index
    %c0_51 = arith.constant 0 : index
    %c64_52 = arith.constant 64 : index
    %56 = vector.load %arg1[%c0_50, %c0_51, %c64_52] : memref<1x4x640xf32, #tpu.memory_space<vmem>>, vector<1x4x512xf32>
    %57 = vector.shape_cast %56 : vector<1x4x512xf32> to vector<4x512xf32>
    %58 = tpu.concatenate %55, %57 in 0 : vector<4x512xf32>, vector<4x512xf32> -> vector<8x512xf32>
    %c72 = arith.constant 72 : index
    %c0_53 = arith.constant 0 : index
    %59 = vector.load %arg8[%c72, %c0_53] : memref<104x512xf32, #tpu.memory_space<vmem>>, vector<8x512xf32>
    tpu.vector_store %arg8[%c72, %c0_53], %58 {strides = array<i32>} : memref<104x512xf32, #tpu.memory_space<vmem>>, vector<8x512xf32>,
    %c0_54 = arith.constant 0 : index
    %c0_55 = arith.constant 0 : index
    %c80 = arith.constant 80 : index
    %60 = vector.load %arg1[%c0_54, %c0_55, %c80] : memref<1x4x640xf32, #tpu.memory_space<vmem>>, vector<1x4x512xf32>
    %61 = vector.shape_cast %60 : vector<1x4x512xf32> to vector<4x512xf32>
    %c0_56 = arith.constant 0 : index
    %c0_57 = arith.constant 0 : index
    %c81 = arith.constant 81 : index
    %62 = vector.load %arg1[%c0_56, %c0_57, %c81] : memref<1x4x640xf32, #tpu.memory_space<vmem>>, vector<1x4x512xf32>
    %63 = vector.shape_cast %62 : vector<1x4x512xf32> to vector<4x512xf32>
    %64 = tpu.concatenate %61, %63 in 0 : vector<4x512xf32>, vector<4x512xf32> -> vector<8x512xf32>
    %c80_58 = arith.constant 80 : index
    %c0_59 = arith.constant 0 : index
    %65 = vector.load %arg8[%c80_58, %c0_59] : memref<104x512xf32, #tpu.memory_space<vmem>>, vector<8x512xf32>
    tpu.vector_store %arg8[%c80_58, %c0_59], %64 {strides = array<i32>} : memref<104x512xf32, #tpu.memory_space<vmem>>, vector<8x512xf32>,
    %c0_60 = arith.constant 0 : index
    %c0_61 = arith.constant 0 : index
    %c82 = arith.constant 82 : index
    %66 = vector.load %arg1[%c0_60, %c0_61, %c82] : memref<1x4x640xf32, #tpu.memory_space<vmem>>, vector<1x4x512xf32>
    %67 = vector.shape_cast %66 : vector<1x4x512xf32> to vector<4x512xf32>
    %c0_62 = arith.constant 0 : index
    %c0_63 = arith.constant 0 : index
    %c83 = arith.constant 83 : index
    %68 = vector.load %arg1[%c0_62, %c0_63, %c83] : memref<1x4x640xf32, #tpu.memory_space<vmem>>, vector<1x4x512xf32>
    %69 = vector.shape_cast %68 : vector<1x4x512xf32> to vector<4x512xf32>
    %70 = tpu.concatenate %67, %69 in 0 : vector<4x512xf32>, vector<4x512xf32> -> vector<8x512xf32>
    %c88 = arith.constant 88 : index
    %c0_64 = arith.constant 0 : index
    %71 = vector.load %arg8[%c88, %c0_64] : memref<104x512xf32, #tpu.memory_space<vmem>>, vector<8x512xf32>
    tpu.vector_store %arg8[%c88, %c0_64], %70 {strides = array<i32>} : memref<104x512xf32, #tpu.memory_space<vmem>>, vector<8x512xf32>,
    %c0_65 = arith.constant 0 : index
    %c0_66 = arith.constant 0 : index
    %c84 = arith.constant 84 : index
    %72 = vector.load %arg1[%c0_65, %c0_66, %c84] : memref<1x4x640xf32, #tpu.memory_space<vmem>>, vector<1x4x512xf32>
    %73 = vector.shape_cast %72 : vector<1x4x512xf32> to vector<4x512xf32>
    %cst = arith.constant 0.000000e+00 : f32
    %74 = vector.broadcast %cst : f32 to vector<4x512xf32>
    %75 = tpu.concatenate %73, %74 in 0 : vector<4x512xf32>, vector<4x512xf32> -> vector<8x512xf32>
    %c96 = arith.constant 96 : index
    %c0_67 = arith.constant 0 : index
    %76 = vector.load %arg8[%c96, %c0_67] : memref<104x512xf32, #tpu.memory_space<vmem>>, vector<8x512xf32>
    tpu.vector_store %arg8[%c96, %c0_67], %75 {strides = array<i32>} : memref<104x512xf32, #tpu.memory_space<vmem>>, vector<8x512xf32>,
    %c0_68 = arith.constant 0 : index
    %c0_69 = arith.constant 0 : index
    %77 = vector.load %arg2[%c0_68, %c0_69] : memref<4x104xf32, #tpu.memory_space<vmem>>, vector<4x104xf32>
    %c0_70 = arith.constant 0 : index
    %c0_71 = arith.constant 0 : index
    %78 = vector.load %arg8[%c0_70, %c0_71] : memref<104x512xf32, #tpu.memory_space<vmem>>, vector<104x512xf32>
    %cst_72 = arith.constant dense<0.000000e+00> : vector<4x512xf32>
    %79 = tpu.matmul %77, %78, %cst_72 {dimension_numbers = #tpu.dot_dimension_numbers<[1], [0], [0], [1], [0, 0, 1, 1], [], []>} : vector<4x104xf32>, vector<104x512xf32>, vector<4x512xf32> -> vector<4x512xf32>
    %c0_73 = arith.constant 0 : index
    %c0_74 = arith.constant 0 : index
    %80 = vector.load %arg3[%c0_73, %c0_74] : memref<4x1xf32, #tpu.memory_space<vmem>>, vector<4x1xf32>
    %81 = vector.broadcast %80 : vector<4x1xf32> to vector<4x512xf32>
    %82 = arith.addf %79, %81 : vector<4x512xf32>
    %cst_75 = arith.constant 0.000000e+00 : f32
    %83 = vector.broadcast %cst_75 : f32 to vector<4x512xf32>
    %84 = arith.maximumf %82, %83 : vector<4x512xf32>
    %c0_76 = arith.constant 0 : index
    %c0_77 = arith.constant 0 : index
    %85 = vector.load %arg6[%c0_76, %c0_77] : memref<1x512xf32, #tpu.memory_space<vmem>>, vector<1x512xf32>
    %86 = vector.broadcast %85 : vector<1x512xf32> to vector<4x512xf32>
    %87 = arith.mulf %84, %86 : vector<4x512xf32>
    %cst_78 = arith.constant 0.000000e+00 : f32
    %88 = vector.broadcast %cst_78 : f32 to vector<4x128xf32>
    %c0_79 = arith.constant 0 : index
    %c0_80 = arith.constant 0 : index
    %89 = vector.load %arg9[%c0_79, %c0_80] : memref<4x768xf32, #tpu.memory_space<vmem>>, vector<4x128xf32>
    tpu.vector_store %arg9[%c0_79, %c0_80], %88 {strides = array<i32>} : memref<4x768xf32, #tpu.memory_space<vmem>>, vector<4x128xf32>,
    %cst_81 = arith.constant 0.000000e+00 : f32
    %90 = vector.broadcast %cst_81 : f32 to vector<4x128xf32>
    %c0_82 = arith.constant 0 : index
    %c640 = arith.constant 640 : index
    %91 = vector.load %arg9[%c0_82, %c640] : memref<4x768xf32, #tpu.memory_space<vmem>>, vector<4x128xf32>
    tpu.vector_store %arg9[%c0_82, %c640], %90 {strides = array<i32>} : memref<4x768xf32, #tpu.memory_space<vmem>>, vector<4x128xf32>,
    %c0_83 = arith.constant 0 : index
    %c128 = arith.constant 128 : index
    %92 = vector.load %arg9[%c0_83, %c128] : memref<4x768xf32, #tpu.memory_space<vmem>>, vector<4x512xf32>
    tpu.vector_store %arg9[%c0_83, %c128], %87 {strides = array<i32>} : memref<4x768xf32, #tpu.memory_space<vmem>>, vector<4x512xf32>,
    %c0_84 = arith.constant 0 : index
    %c86 = arith.constant 86 : index
    %93 = vector.load %arg9[%c0_84, %c86] : memref<4x768xf32, #tpu.memory_space<vmem>>, vector<4x512xf32>
    %c0_85 = arith.constant 0 : index
    %c87 = arith.constant 87 : index
    %94 = vector.load %arg9[%c0_85, %c87] : memref<4x768xf32, #tpu.memory_space<vmem>>, vector<4x512xf32>
    %95 = tpu.concatenate %93, %94 in 0 : vector<4x512xf32>, vector<4x512xf32> -> vector<8x512xf32>
    %c0_86 = arith.constant 0 : index
    %c0_87 = arith.constant 0 : index
    %96 = vector.load %arg8[%c0_86, %c0_87] : memref<104x512xf32, #tpu.memory_space<vmem>>, vector<8x512xf32>
    tpu.vector_store %arg8[%c0_86, %c0_87], %95 {strides = array<i32>} : memref<104x512xf32, #tpu.memory_space<vmem>>, vector<8x512xf32>,
    %c0_88 = arith.constant 0 : index
    %c88_89 = arith.constant 88 : index
    %97 = vector.load %arg9[%c0_88, %c88_89] : memref<4x768xf32, #tpu.memory_space<vmem>>, vector<4x512xf32>
    %c0_90 = arith.constant 0 : index
    %c89 = arith.constant 89 : index
    %98 = vector.load %arg9[%c0_90, %c89] : memref<4x768xf32, #tpu.memory_space<vmem>>, vector<4x512xf32>
    %99 = tpu.concatenate %97, %98 in 0 : vector<4x512xf32>, vector<4x512xf32> -> vector<8x512xf32>
    %c8_91 = arith.constant 8 : index
    %c0_92 = arith.constant 0 : index
    %100 = vector.load %arg8[%c8_91, %c0_92] : memref<104x512xf32, #tpu.memory_space<vmem>>, vector<8x512xf32>
    tpu.vector_store %arg8[%c8_91, %c0_92], %99 {strides = array<i32>} : memref<104x512xf32, #tpu.memory_space<vmem>>, vector<8x512xf32>,
    %c0_93 = arith.constant 0 : index
    %c90 = arith.constant 90 : index
    %101 = vector.load %arg9[%c0_93, %c90] : memref<4x768xf32, #tpu.memory_space<vmem>>, vector<4x512xf32>
    %c0_94 = arith.constant 0 : index
    %c106 = arith.constant 106 : index
    %102 = vector.load %arg9[%c0_94, %c106] : memref<4x768xf32, #tpu.memory_space<vmem>>, vector<4x512xf32>
    %103 = tpu.concatenate %101, %102 in 0 : vector<4x512xf32>, vector<4x512xf32> -> vector<8x512xf32>
    %c16_95 = arith.constant 16 : index
    %c0_96 = arith.constant 0 : index
    %104 = vector.load %arg8[%c16_95, %c0_96] : memref<104x512xf32, #tpu.memory_space<vmem>>, vector<8x512xf32>
    tpu.vector_store %arg8[%c16_95, %c0_96], %103 {strides = array<i32>} : memref<104x512xf32, #tpu.memory_space<vmem>>, vector<8x512xf32>,
    %c0_97 = arith.constant 0 : index
    %c107 = arith.constant 107 : index
    %105 = vector.load %arg9[%c0_97, %c107] : memref<4x768xf32, #tpu.memory_space<vmem>>, vector<4x512xf32>
    %c0_98 = arith.constant 0 : index
    %c108 = arith.constant 108 : index
    %106 = vector.load %arg9[%c0_98, %c108] : memref<4x768xf32, #tpu.memory_space<vmem>>, vector<4x512xf32>
    %107 = tpu.concatenate %105, %106 in 0 : vector<4x512xf32>, vector<4x512xf32> -> vector<8x512xf32>
    %c24_99 = arith.constant 24 : index
    %c0_100 = arith.constant 0 : index
    %108 = vector.load %arg8[%c24_99, %c0_100] : memref<104x512xf32, #tpu.memory_space<vmem>>, vector<8x512xf32>
    tpu.vector_store %arg8[%c24_99, %c0_100], %107 {strides = array<i32>} : memref<104x512xf32, #tpu.memory_space<vmem>>, vector<8x512xf32>,
    %c0_101 = arith.constant 0 : index
    %c109 = arith.constant 109 : index
    %109 = vector.load %arg9[%c0_101, %c109] : memref<4x768xf32, #tpu.memory_space<vmem>>, vector<4x512xf32>
    %c0_102 = arith.constant 0 : index
    %c110 = arith.constant 110 : index
    %110 = vector.load %arg9[%c0_102, %c110] : memref<4x768xf32, #tpu.memory_space<vmem>>, vector<4x512xf32>
    %111 = tpu.concatenate %109, %110 in 0 : vector<4x512xf32>, vector<4x512xf32> -> vector<8x512xf32>
    %c32_103 = arith.constant 32 : index
    %c0_104 = arith.constant 0 : index
    %112 = vector.load %arg8[%c32_103, %c0_104] : memref<104x512xf32, #tpu.memory_space<vmem>>, vector<8x512xf32>
    tpu.vector_store %arg8[%c32_103, %c0_104], %111 {strides = array<i32>} : memref<104x512xf32, #tpu.memory_space<vmem>>, vector<8x512xf32>,
    %c0_105 = arith.constant 0 : index
    %c126 = arith.constant 126 : index
    %113 = vector.load %arg9[%c0_105, %c126] : memref<4x768xf32, #tpu.memory_space<vmem>>, vector<4x512xf32>
    %c0_106 = arith.constant 0 : index
    %c127 = arith.constant 127 : index
    %114 = vector.load %arg9[%c0_106, %c127] : memref<4x768xf32, #tpu.memory_space<vmem>>, vector<4x512xf32>
    %115 = tpu.concatenate %113, %114 in 0 : vector<4x512xf32>, vector<4x512xf32> -> vector<8x512xf32>
    %c40_107 = arith.constant 40 : index
    %c0_108 = arith.constant 0 : index
    %116 = vector.load %arg8[%c40_107, %c0_108] : memref<104x512xf32, #tpu.memory_space<vmem>>, vector<8x512xf32>
    tpu.vector_store %arg8[%c40_107, %c0_108], %115 {strides = array<i32>} : memref<104x512xf32, #tpu.memory_space<vmem>>, vector<8x512xf32>,
    %c0_109 = arith.constant 0 : index
    %c128_110 = arith.constant 128 : index
    %117 = vector.load %arg9[%c0_109, %c128_110] : memref<4x768xf32, #tpu.memory_space<vmem>>, vector<4x512xf32>
    %c0_111 = arith.constant 0 : index
    %c129 = arith.constant 129 : index
    %118 = vector.load %arg9[%c0_111, %c129] : memref<4x768xf32, #tpu.memory_space<vmem>>, vector<4x512xf32>
    %119 = tpu.concatenate %117, %118 in 0 : vector<4x512xf32>, vector<4x512xf32> -> vector<8x512xf32>
    %c48_112 = arith.constant 48 : index
    %c0_113 = arith.constant 0 : index
    %120 = vector.load %arg8[%c48_112, %c0_113] : memref<104x512xf32, #tpu.memory_space<vmem>>, vector<8x512xf32>
    tpu.vector_store %arg8[%c48_112, %c0_113], %119 {strides = array<i32>} : memref<104x512xf32, #tpu.memory_space<vmem>>, vector<8x512xf32>,
    %c0_114 = arith.constant 0 : index
    %c130 = arith.constant 130 : index
    %121 = vector.load %arg9[%c0_114, %c130] : memref<4x768xf32, #tpu.memory_space<vmem>>, vector<4x512xf32>
    %c0_115 = arith.constant 0 : index
    %c146 = arith.constant 146 : index
    %122 = vector.load %arg9[%c0_115, %c146] : memref<4x768xf32, #tpu.memory_space<vmem>>, vector<4x512xf32>
    %123 = tpu.concatenate %121, %122 in 0 : vector<4x512xf32>, vector<4x512xf32> -> vector<8x512xf32>
    %c56_116 = arith.constant 56 : index
    %c0_117 = arith.constant 0 : index
    %124 = vector.load %arg8[%c56_116, %c0_117] : memref<104x512xf32, #tpu.memory_space<vmem>>, vector<8x512xf32>
    tpu.vector_store %arg8[%c56_116, %c0_117], %123 {strides = array<i32>} : memref<104x512xf32, #tpu.memory_space<vmem>>, vector<8x512xf32>,
    %c0_118 = arith.constant 0 : index
    %c147 = arith.constant 147 : index
    %125 = vector.load %arg9[%c0_118, %c147] : memref<4x768xf32, #tpu.memory_space<vmem>>, vector<4x512xf32>
    %c0_119 = arith.constant 0 : index
    %c148 = arith.constant 148 : index
    %126 = vector.load %arg9[%c0_119, %c148] : memref<4x768xf32, #tpu.memory_space<vmem>>, vector<4x512xf32>
    %127 = tpu.concatenate %125, %126 in 0 : vector<4x512xf32>, vector<4x512xf32> -> vector<8x512xf32>
    %c64_120 = arith.constant 64 : index
    %c0_121 = arith.constant 0 : index
    %128 = vector.load %arg8[%c64_120, %c0_121] : memref<104x512xf32, #tpu.memory_space<vmem>>, vector<8x512xf32>
    tpu.vector_store %arg8[%c64_120, %c0_121], %127 {strides = array<i32>} : memref<104x512xf32, #tpu.memory_space<vmem>>, vector<8x512xf32>,
    %c0_122 = arith.constant 0 : index
    %c149 = arith.constant 149 : index
    %129 = vector.load %arg9[%c0_122, %c149] : memref<4x768xf32, #tpu.memory_space<vmem>>, vector<4x512xf32>
    %c0_123 = arith.constant 0 : index
    %c150 = arith.constant 150 : index
    %130 = vector.load %arg9[%c0_123, %c150] : memref<4x768xf32, #tpu.memory_space<vmem>>, vector<4x512xf32>
    %131 = tpu.concatenate %129, %130 in 0 : vector<4x512xf32>, vector<4x512xf32> -> vector<8x512xf32>
    %c72_124 = arith.constant 72 : index
    %c0_125 = arith.constant 0 : index
    %132 = vector.load %arg8[%c72_124, %c0_125] : memref<104x512xf32, #tpu.memory_space<vmem>>, vector<8x512xf32>
    tpu.vector_store %arg8[%c72_124, %c0_125], %131 {strides = array<i32>} : memref<104x512xf32, #tpu.memory_space<vmem>>, vector<8x512xf32>,
    %c0_126 = arith.constant 0 : index
    %c166 = arith.constant 166 : index
    %133 = vector.load %arg9[%c0_126, %c166] : memref<4x768xf32, #tpu.memory_space<vmem>>, vector<4x512xf32>
    %c0_127 = arith.constant 0 : index
    %c167 = arith.constant 167 : index
    %134 = vector.load %arg9[%c0_127, %c167] : memref<4x768xf32, #tpu.memory_space<vmem>>, vector<4x512xf32>
    %135 = tpu.concatenate %133, %134 in 0 : vector<4x512xf32>, vector<4x512xf32> -> vector<8x512xf32>
    %c80_128 = arith.constant 80 : index
    %c0_129 = arith.constant 0 : index
    %136 = vector.load %arg8[%c80_128, %c0_129] : memref<104x512xf32, #tpu.memory_space<vmem>>, vector<8x512xf32>
    tpu.vector_store %arg8[%c80_128, %c0_129], %135 {strides = array<i32>} : memref<104x512xf32, #tpu.memory_space<vmem>>, vector<8x512xf32>,
    %c0_130 = arith.constant 0 : index
    %c168 = arith.constant 168 : index
    %137 = vector.load %arg9[%c0_130, %c168] : memref<4x768xf32, #tpu.memory_space<vmem>>, vector<4x512xf32>
    %c0_131 = arith.constant 0 : index
    %c169 = arith.constant 169 : index
    %138 = vector.load %arg9[%c0_131, %c169] : memref<4x768xf32, #tpu.memory_space<vmem>>, vector<4x512xf32>
    %139 = tpu.concatenate %137, %138 in 0 : vector<4x512xf32>, vector<4x512xf32> -> vector<8x512xf32>
    %c88_132 = arith.constant 88 : index
    %c0_133 = arith.constant 0 : index
    %140 = vector.load %arg8[%c88_132, %c0_133] : memref<104x512xf32, #tpu.memory_space<vmem>>, vector<8x512xf32>
    tpu.vector_store %arg8[%c88_132, %c0_133], %139 {strides = array<i32>} : memref<104x512xf32, #tpu.memory_space<vmem>>, vector<8x512xf32>,
    %c0_134 = arith.constant 0 : index
    %c170 = arith.constant 170 : index
    %141 = vector.load %arg9[%c0_134, %c170] : memref<4x768xf32, #tpu.memory_space<vmem>>, vector<4x512xf32>
    %cst_135 = arith.constant 0.000000e+00 : f32
    %142 = vector.broadcast %cst_135 : f32 to vector<4x512xf32>
    %143 = tpu.concatenate %141, %142 in 0 : vector<4x512xf32>, vector<4x512xf32> -> vector<8x512xf32>
    %c96_136 = arith.constant 96 : index
    %c0_137 = arith.constant 0 : index
    %144 = vector.load %arg8[%c96_136, %c0_137] : memref<104x512xf32, #tpu.memory_space<vmem>>, vector<8x512xf32>
    tpu.vector_store %arg8[%c96_136, %c0_137], %143 {strides = array<i32>} : memref<104x512xf32, #tpu.memory_space<vmem>>, vector<8x512xf32>,
    %c0_138 = arith.constant 0 : index
    %c0_139 = arith.constant 0 : index
    %145 = vector.load %arg4[%c0_138, %c0_139] : memref<4x104xf32, #tpu.memory_space<vmem>>, vector<4x104xf32>
    %c0_140 = arith.constant 0 : index
    %c0_141 = arith.constant 0 : index
    %146 = vector.load %arg8[%c0_140, %c0_141] : memref<104x512xf32, #tpu.memory_space<vmem>>, vector<104x512xf32>
    %cst_142 = arith.constant dense<0.000000e+00> : vector<4x512xf32>
    %147 = tpu.matmul %145, %146, %cst_142 {dimension_numbers = #tpu.dot_dimension_numbers<[1], [0], [0], [1], [0, 0, 1, 1], [], []>} : vector<4x104xf32>, vector<104x512xf32>, vector<4x512xf32> -> vector<4x512xf32>
    %c0_143 = arith.constant 0 : index
    %c0_144 = arith.constant 0 : index
    %148 = vector.load %arg5[%c0_143, %c0_144] : memref<4x1xf32, #tpu.memory_space<vmem>>, vector<4x1xf32>
    %149 = vector.broadcast %148 : vector<4x1xf32> to vector<4x512xf32>
    %150 = arith.addf %147, %149 : vector<4x512xf32>
    %cst_145 = arith.constant 0.000000e+00 : f32
    %151 = vector.broadcast %cst_145 : f32 to vector<4x512xf32>
    %152 = arith.maximumf %150, %151 : vector<4x512xf32>
    %c0_146 = arith.constant 0 : index
    %c0_147 = arith.constant 0 : index
    %c0_148 = arith.constant 0 : index
    %153 = vector.load %arg7[%c0_146, %c0_147, %c0_148] : memref<1x4x512xf32, #tpu.memory_space<vmem>>, vector<1x4x512xf32>
    %154 = vector.shape_cast %153 : vector<1x4x512xf32> to vector<4x512xf32>
    %155 = vector.shape_cast %152 : vector<4x512xf32> to vector<1x4x512xf32>
    tpu.vector_store %arg7[%c0_146, %c0_147, %c0_148], %155 {strides = array<i32>} : memref<1x4x512xf32, #tpu.memory_space<vmem>>, vector<1x4x512xf32>,
    return
  }
  func.func @transform_0(%arg0: i32) -> (i32, i32, i32) {
    %c0_i32 = arith.constant 0 : i32
    %c0_i32_0 = arith.constant 0 : i32
    %c0_i32_1 = arith.constant 0 : i32
    return %arg0, %c0_i32, %c0_i32_0 : i32, i32, i32
  }
  func.func @transform_1(%arg0: i32) -> (i32, i32) {
    %c0_i32 = arith.constant 0 : i32
    %c0_i32_0 = arith.constant 0 : i32
    %c0_i32_1 = arith.constant 0 : i32
    return %c0_i32, %c0_i32_0 : i32, i32
  }
  func.func @transform_2(%arg0: i32) -> (i32, i32) {
    %c0_i32 = arith.constant 0 : i32
    %c0_i32_0 = arith.constant 0 : i32
    %c0_i32_1 = arith.constant 0 : i32
    return %c0_i32, %c0_i32_0 : i32, i32
  }
  func.func @transform_3(%arg0: i32) -> (i32, i32) {
    %c0_i32 = arith.constant 0 : i32
    %c0_i32_0 = arith.constant 0 : i32
    %c0_i32_1 = arith.constant 0 : i32
    return %c0_i32, %c0_i32_0 : i32, i32
  }
  func.func @transform_4(%arg0: i32) -> (i32, i32) {
    %c0_i32 = arith.constant 0 : i32
    %c0_i32_0 = arith.constant 0 : i32
    %c0_i32_1 = arith.constant 0 : i32
    return %c0_i32, %c0_i32_0 : i32, i32
  }
  func.func @transform_5(%arg0: i32) -> (i32, i32) {
    %c0_i32 = arith.constant 0 : i32
    %c0_i32_0 = arith.constant 0 : i32
    %c0_i32_1 = arith.constant 0 : i32
    return %c0_i32, %c0_i32_0 : i32, i32
  }
  func.func @transform_6(%arg0: i32) -> (i32, i32, i32) {
    %c0_i32 = arith.constant 0 : i32
    %c0_i32_0 = arith.constant 0 : i32
    %c0_i32_1 = arith.constant 0 : i32
    return %arg0, %c0_i32, %c0_i32_0 : i32, i32, i32
  }
}

</mosaic_0001>

<bundles_post_ra>
// kernel: tpu_custom_call.1
= control target key start
LH: loop header
LB: loop body
LE: loop exit
PB: predicated region body
PF: predicated region fallthrough
CT: control target
= control target key end

     0   :  { %11 = vsyncpa [#allocation5], 0  ;;  %s4506_s0 = inlined_call_operand.hbm [shape: f32[2,4,640], index: 0, kind: input, shape index: {}]   ;;  %s4507_s1 = inlined_call_operand.vmem [shape: f32[4,104], index: 1, kind: input, shape index: {}]   ;;  %s4508_s2 = inlined_call_operand.vmem [shape: f32[4,1], index: 2, kind: input, shape index: {}]   ;;  %s4509_s3 = inlined_call_operand.vmem [shape: f32[4,104], index: 3, kind: input, shape index: {}]   ;;  %s4510_s4 = inlined_call_operand.vmem [shape: f32[4,1], index: 4, kind: input, shape index: {}]   ;;  %s4511_s5 = inlined_call_operand.vmem [shape: f32[1,512], index: 5, kind: input, shape index: {}]   ;;  %s4512_s6 = inlined_call_operand.hbm [shape: f32[2,4,512], index: 6, kind: output, shape index: {}]  }
   0x1   :  { %13 = vsyncpa [#allocation5 + $0x1], 0 }
   0x2   :  { %14 = vsyncpa [#allocation6], 0 }
   0x3   :  { %16 = vsyncpa [#allocation6 + $0x1], 0  ;;  %s3320_s21 = smov 0   ;;  %s3322_s22 = smov 0  }
   0x4   :  { %s3324_s23 = smov 0   ;;  %s3326_s24 = smov 0  }
   0x5 LB: > { %s3341_s25 = sadd.s32 4294967295, %s3257_s24   ;;  %s2417_s26 = sadd.s32 4294967294, %s3257_s24   ;;  %s3257_s24 = sphi %s3326_s24, %s4528_s24   ;;  %s3253_s23 = sphi %s3324_s23, %s4527_s23   ;;  %s3249_s22 = sphi %s3322_s22, %s4526_s22   ;;  %s3245_s21 = sphi %s3320_s21, %s4525_s21  }
   0x6   : > { %s3345_s27 = sadd.s32 1, %s3257_s24   ;;  %s29_s28 = sadd.s32 1, %s3253_s23 }
   0x7   : > { %s26_s29 = ssub.s32 %s3257_s24, %s3345_s27  ;;  %p36_p0 = scmp.ne.s32.totalorder %s3253_s23, %s3249_s22 }
   0x8   : > { %p27_p1 = scmp.eq.s32.totalorder %s26_s29, 0  ;;  %p37_p2 = scmp.eq.s32.totalorder %s3257_s24, 0 }
   0x9   : > { %p42_p3 = scmp.ne.s32.totalorder %s3249_s22, %s3245_s21  ;;  %p43_p4 = scmp.eq.s32.totalorder %s3341_s25, 0 }
   0xa   : > { %s3357_s30 = scalar_select %p27_p1, %s3253_s23, %s29_s28  }
   0xb   : > { %p38_p5 = por %p37_p2, %p36_p0  ;;  %p3359_p6 = por %p43_p4, %p42_p3 }
   0xc   : > { %p171_p7 = scmp.eq.s32.totalorder %s3341_s25, 1  ;;  %p177_p8 = scmp.eq.s32.totalorder %s2417_s26, 1 }
   0xd   : > { %p2544_p10 = scmp.lt.s32.totalorder %s3257_s24, 2  ;;  %s212_s10 = sand.u32 1, %s3253_s23  }
   0xe   : > { %p3366_p11 = por %p171_p7, %p36_p0  ;;  %p3370_p12 = por %p177_p8, %p42_p3 }
   0xf   : > { %s2530_s11 = smul.u32 320, %s3257_s24  ;;  %p3381_p13 = pnand %p2544_p10, %p38_p5 }
  0x10   : > { %s4516_s8 = scalar_select %p3366_p11, 1, 0 }
  0x11   : > { %s4517_s9 = scalar_select %p3370_p12, 1, 0 }
  0x12   : > { %s2529_s12 = smul.u32 20, %s212_s10  ;;  %s3379_s15 = scalar_lea.hbm %s4506_s0, %s2530_s11 }
  0x13   : > { %s213_s19 = scalar_lea.sflag [#allocation5], %s212_s10  ;;  %s3161_s20 = scalar_lea.hbm %s3379_s15, 320 }
  0x14   : > { %s216_s17 = scalar_lea.vmem [#allocation4], %s2529_s12  ;;  %p3162_p2 = scmp.ne.s32.totalorder %s3379_s15, %s3161_s20 }
  0x15   : > { %s224_s18 = sshll.u32 %s216_s17, 4  ;;  %p3163_p3 = pneg %p3381_p13  ;;  %s3386_s18 = int_to_ptr.vmem [resolvable:$true] %s224_s18 }
  0x16   : > { %s3166_s29 = scalar_lea.hbm %s4506_s0, 640  ;;  %p3167_p7 = scmp.lt.u32.totalorder %s3379_s15, %s4506_s0 }
  0x17   : > { %p3164_p4 = pnand %p3163_p3, %p3162_p2  ;;  %p3168_p8 = scmp.lt.u32.totalorder %s3166_s29, %s3161_s20 }
  0x18   : > { %p3170_p9 = scmp.lt.u32.totalorder %s3161_s20, %s3379_s15 }
  0x19   : > { %p3165_p5 = pneg %p3164_p4  ;;  %p3169_p10 = por %p3168_p8, %p3167_p7 }
  0x1b   : > { %p3171_p0 = por %p3170_p9, %p3169_p10 }
  0x1d   : > { %p3172_p1 = pnand %p3171_p0, %p3165_p5 }
  0x1f   : > { %3175 = shalt.err (!%p3172_p1)
}
  0x20   : > { %s3176_s10 = scalar_lea.vmem %s3386_s18, 320  ;;  %s3259_s12 = smov [#allocation4]  }
  0x21   : > { %p3177_p2 = scmp.ne.s32.totalorder %s3386_s18, %s3176_s10  ;;  %s3181_s14 = sshll.u32 %s3259_s12, 4  ;;  %s3182_s14 = int_to_ptr.vmem [resolvable:$false] %s3181_s14 }
  0x22   : > { %s3183_s17 = scalar_lea.vmem %s3182_s14, 640  ;;  %p3184_p11 = scmp.lt.s32.totalorder %s3386_s18, %s3182_s14 }
  0x23   : > { %p3179_p4 = pnand %p3177_p2, %p3163_p3  ;;  %p3185_p7 = scmp.lt.s32.totalorder %s3183_s17, %s3176_s10 }
  0x25   : > { %p3180_p12 = pneg %p3179_p4  ;;  %p3186_p8 = por %p3185_p7, %p3184_p11 }
  0x27   : > { %p3187_p9 = pnand %p3186_p8, %p3180_p12 }
  0x29   : > { %3190 = shalt.err (!%p3187_p9)
}
  0x2a   : > { %2539 = dma.hbm_to_vmem [thread:$0]  (!%p3381_p13), %s3379_s15, 320, %s3386_s18, %s213_s19  }
  0x2b   : > { %p4519_p0 = scmp.lt.s32.totalorder %s3257_s24, 3  ;;  %p4520_p1 = scmp.ge.s32.totalorder %s3257_s24, 1 }
  0x2d   : > { %p230_p3 = pnand %p4520_p1, %p4519_p0 }
  0x2e   : > { %s3419_s20 = sand.u32 (!%p230_p3), 1, %s3249_s22  }
  0x2f   : > { %233 = sbr.rel (%p230_p3) target bundleno = 1189 (0x4a5), region = 44  ;;  %s236_s28 = scalar_lea.sflag (!%p230_p3), [#allocation5], %s3419_s20 }
  0x30   : > { %s2531_s26 = smul.u32 (!%p230_p3), 20, %s3419_s20 }
  0x32   : > { %s3423_s29 = scalar_lea.vmem (!%p230_p3), [#allocation4], %s2531_s26 }
  0x36   : > { %3236 = dma.done.wait (%p3359_p6), %s236_s28, 320  }
  0x37   : > { %3238 = vsyncadd (%p3359_p6), %s236_s28, 4294966976  ;;  %v3430_v0 = vld [vmem:[%s3423_s29] sm:$0xff]  ;;  %v3433_v1 = vld [vmem:[%s3423_s29 + $0x8] sm:$0xff]  ;;  %s3260_s7 = smov 127   ;;  %s3261_s15 = smov 112   ;;  %vm304_vm0 = vcmask 1043456  }
  0x38   : > { %v3436_v2 = vld [vmem:[%s3423_s29 + $0x10] sm:$0xf]  ;;  %v324_v3 = vcombine.low %v3433_v1, %v3433_v1  ;;  %v3442_v4 = vcombine.low %v3430_v0, %v3430_v0  ;;  %v3545_v43 = vcombine.high %v3430_v0, %v3430_v0  ;;  %s3262_s16 = smov 44   ;;  %vm295_vm1 = vcmask 1039360   ;;  %s3263_s18 = smov 126  }
  0x39   : > { %v325_v5 = vcombine.low %v3436_v2, %v3436_v2  ;;  %v3447_v6 = vld [vmem:[%s3423_s29 + $0x10] sm:$0xf]  ;;  %v3559_v52 = vcombine.high %v3433_v1, %v3433_v1  ;;  %vm401_vm2 = vcmask 916480   ;;  %s3264_s19 = smov 124   ;;  %s3265_s11 = smov 107   ;;  %vm365_vm3 = vcmask 1031168  }
  0x3a   : > { %v2602_v7 = vpack.i.bf16 %v324_v3, %v3430_v0  ;;  %v2612_v8 = vpack.i.bf16 %v3430_v0, %v3442_v4  ;;  %v390_v10 = vcombine.low %v3447_v6, %v3447_v6  ;;  %v3458_v11 = vld [vmem:[%s3423_s29 + $0x10] sm:$0xf]  ;;  %v2627_v13 = vpack.i.bf16 %v3433_v1, %v324_v3  ;;  %s3266_s13 = smov 105   ;;  %s3267_s10 = smov 88  }
  0x3b   : > { %v2607_v9 = vpack.i.bf16 %v325_v5, %v3433_v1  ;;  %v456_v14 = vcombine.low %v3458_v11, %v3458_v11  ;;  %v3467_v15 = vld [vmem:[%s3423_s29 + $0x10] sm:$0xf]  ;;  %v2662_v23 = vpack.i.bf16 %v3442_v4, %v3442_v4  ;;  %v1039_v44 = vsel %vm304_vm0, %v3545_v43, 0.0  ;;  %s3268_s12 = smov 86   ;;  %s3269_s14 = smov 84  }
  0x3c   : > { %2603 = vrot.lane.b32.xlu0 %v2602_v7, %s3260_s7  ;;  %2613 = vrot.lane.b32.xlu1 %v2612_v8, %s3260_s7  ;;  %v2622_v12 = vpack.i.bf16 %v390_v10, %v3433_v1  ;;  %v521_v17 = vcombine.low %v3467_v15, %v3467_v15  ;;  %v3475_v18 = vld [vmem:[%s3423_s29 + $0x10] sm:$0xf]  ;;  %s3270_s17 = smov 67   ;;  %s3271_s26 = smov 65   ;;  %vm431_vm4 = vcmask 1014784   ;;  %vm496_vm5 = vcmask 875520  }
  0x3d   : > { %v2632_v16 = vpack.i.bf16 %v3442_v4, %v456_v14  ;;  %v586_v20 = vcombine.low %v3475_v18, %v3475_v18  ;;  %v3486_v22 = vld [vmem:[%s3423_s29 + $0x10] sm:$0xf]  ;;  %s3272_s28 = smov 48   ;;  %vm561_vm6 = vcmask 859136   ;;  %vm626_vm7 = vcmask 719872   ;;  %p4522_p11 = scmp.ne.s32.totalorder %s4516_s8, 0 }
  0x3e   : > { %v2647_v19 = vpack.i.bf16 %v521_v17, %v3433_v1  ;;  %v651_v24 = vcombine.low %v3486_v22, %v3486_v22  ;;  %v3495_v25 = vld [vmem:[%s3423_s29 + $0x10] sm:$0xf]  ;;  %vm691_vm8 = vcmask 703488   ;;  %vm756_vm9 = vcmask 687104  }
  0x3f   : > { %v2657_v21 = vpack.i.bf16 %v586_v20, %v3433_v1  ;;  %v716_v27 = vcombine.low %v3495_v25, %v3495_v25  ;;  %v3503_v28 = vld [vmem:[%s3423_s29 + $0x10] sm:$0xf]  ;;  %vm821_vm10 = vcmask 547840   ;;  %vm886_vm11 = vcmask 531456  }
  0x40   : > { %2608 = vrot.lane.b32.xlu0 %v2607_v9, %s3260_s7  ;;  %2618 = vrot.lane.b32.xlu1 %v2602_v7, %s3261_s15  ;;  %v2672_v26 = vpack.i.bf16 %v651_v24, %v3433_v1  ;;  %v781_v30 = vcombine.low %v3503_v28, %v3503_v28  ;;  %v3511_v31 = vld [vmem:[%s3423_s29 + $0x10] sm:$0xf]  ;;  %vm951_vm12 = vcmask 392192   ;;  %vm1016_vm13 = vcmask 375808  }
  0x41   : > { %v2682_v29 = vpack.i.bf16 %v3442_v4, %v716_v27  ;;  %v846_v33 = vcombine.low %v3511_v31, %v3511_v31  ;;  %v3522_v35 = vld [vmem:[%s3423_s29 + $0x10] sm:$0xf]  ;;  %vm1058_vm14 = vcmask 359424   ;;  %vm1130_vm15 = vcmask 850944  }
  0x42   : > { %v2697_v32 = vpack.i.bf16 %v3430_v0, %v781_v30  ;;  %v911_v36 = vcombine.low %v3522_v35, %v3522_v35  ;;  %v3529_v37 = vld [vmem:[%s3423_s29 + $0x10] sm:$0xf] }
  0x43   : > { %v2707_v34 = vpack.i.bf16 %v3442_v4, %v846_v33  ;;  %v976_v39 = vcombine.low %v3529_v37, %v3529_v37  ;;  %v3136_v41 = vld [vmem:[%s3423_s29 + $0x10] ss:$0 sps:$4 sm:$0xff]  }
  0x44   : > { %2623 = vrot.lane.b32.xlu0 %v2622_v12, %s3261_s15  ;;  %2628 = vrot.lane.b32.xlu1 %v2627_v13, %s3260_s7  ;;  %v2722_v38 = vpack.i.bf16 %v3430_v0, %v911_v36  ;;  %v2747_v42 = vpack.i.bf16 %v3442_v4, %v3136_v41 }
  0x45   : > { %v2732_v40 = vpack.i.bf16 %v3442_v4, %v976_v39 }
  0x48   : > { %2633 = vrot.lane.b32.xlu0 %v2632_v16, %s3260_s7  ;;  %2638 = vrot.lane.b32.xlu1 %v2612_v8, %s3261_s15 }
  0x4c   : > { %2643 = vrot.lane.b32.xlu0 %v2602_v7, %s3260_s7  ;;  %2648 = vrot.lane.b32.xlu1 %v2647_v19, %s3260_s7 }
  0x50   : > { %2653 = vrot.lane.b32.xlu0 %v2602_v7, %s3260_s7  ;;  %2658 = vrot.lane.b32.xlu1 %v2657_v21, %s3260_s7 }
  0x54   : > { %2663 = vrot.lane.b32.xlu0 %v2662_v23, %s3260_s7  ;;  %2668 = vrot.lane.b32.xlu1 %v2602_v7, %s3260_s7 }
  0x58   : > { %2673 = vrot.lane.b32.xlu0 %v2672_v26, %s3260_s7  ;;  %2678 = vrot.lane.b32.xlu1 %v2627_v13, %s3261_s15 }
  0x5c   : > { %2683 = vrot.lane.b32.xlu0 %v2682_v29, %s3261_s15  ;;  %2688 = vrot.lane.b32.xlu1 %v2612_v8, %s3260_s7 }
  0x60   : > { %2693 = vrot.lane.b32.xlu0 %v2627_v13, %s3260_s7  ;;  %2698 = vrot.lane.b32.xlu1 %v2697_v32, %s3260_s7 }
  0x64   : > { %2703 = vrot.lane.b32.xlu0 %v2627_v13, %s3260_s7  ;;  %2708 = vrot.lane.b32.xlu1 %v2707_v34, %s3260_s7 }
  0x68   : > { %2713 = vrot.lane.b32.xlu0 %v2612_v8, %s3260_s7  ;;  %2718 = vrot.lane.b32.xlu1 %v2627_v13, %s3260_s7 }
  0x6c   : > { %2723 = vrot.lane.b32.xlu0 %v2722_v38, %s3260_s7  ;;  %2728 = vrot.lane.b32.xlu1 %v2627_v13, %s3260_s7 }
  0x70   : > { %2733 = vrot.lane.b32.xlu0 %v2732_v40, %s3260_s7  ;;  %2738 = vrot.lane.b32.xlu1 %v2612_v8, %s3260_s7 }
  0x74   : > { %2743 = vrot.lane.b32.xlu0 %v2627_v13, %s3260_s7  ;;  %2748 = vrot.lane.b32.xlu1 %v2747_v42, %s3260_s7 }
  0x78   : > { %1050 = vrot.lane.b32.xlu1 %v1039_v44, %s3262_s16 }
  0xae   : > { %v2604_v45 = vpop.permute.xlu0 %2603  ;;  %v3552_v46 = vpop.permute.xlu1 %2613 }
  0xaf   : > { %v2606_v47 = vunpack.i.h.bf16 %v2604_v45  ;;  %v2605_v48 = vunpack.i.l.bf16 %v2604_v45  ;;  %v2616_v57 = vunpack.i.h.bf16 %v3552_v46  ;;  %v2615_v58 = vunpack.i.l.bf16 %v3552_v46 }
  0xb1   : > { %v337_v51 = vsel %vm295_vm1, %v2605_v48, %v2606_v47 }
  0xb2   : > { %v2609_v49 = vpop.permute.xlu0 %2608  ;;  %v3554_v50 = vpop.permute.xlu1 %2618  ;;  %v346_v3 = vsel %vm304_vm0, %v3545_v43, %v337_v51 }
  0xb3   : > { %v2611_v53 = vunpack.i.h.bf16 %v2609_v49  ;;  %v2610_v54 = vunpack.i.l.bf16 %v2609_v49  ;;  %v2621_v55 = vunpack.i.h.bf16 %v3554_v50  ;;  %v2620_v56 = vunpack.i.l.bf16 %v3554_v50 }
  0xb5   : > { %v338_v59 = vsel %vm295_vm1, %v2606_v47, %v2610_v54  ;;  %v339_v60 = vsel %vm295_vm1, %v2610_v54, %v2611_v53  ;;  %v349_v61 = vsel %vm304_vm0, %v3436_v2, %v2611_v53  ;;  %v403_v7 = vsel %vm401_vm2, %v2620_v56, %v2621_v55 }
  0xb6   : > { %v2624_v62 = vpop.permute.xlu0 %2623  ;;  %v2629_v63 = vpop.permute.xlu1 %2628  ;;  %v347_v4 = vsel %vm304_vm0, %v3433_v1, %v338_v59  ;;  %v348_v5 = vsel %vm304_vm0, %v3559_v52, %v339_v60  ;;  %v336_v2 = vsel %vm295_vm1, %v2615_v58, %v2605_v48  ;;  %v412_v17 = vsel %vm304_vm0, %v3545_v43, %v403_v7 }
  0xb7   : > { %v2626_v8 = vunpack.i.h.bf16 %v2624_v62  ;;  %v2625_v9 = vunpack.i.l.bf16 %v2624_v62  ;;  %v2631_v10 = vunpack.i.h.bf16 %v2629_v63  ;;  %v2630_v12 = vunpack.i.l.bf16 %v2629_v63 }
  0xb8   : > { %v2752_v13 = vpack.i.bf16 %v347_v4, %v346_v3  ;;  %v2757_v14 = vpack.i.bf16 %v349_v61, %v348_v5  ;;  %v345_v33 = vsel %vm304_vm0, %v3430_v0, %v336_v2 }
  0xb9   : > { %v404_v16 = vsel %vm401_vm2, %v2621_v55, %v2625_v9  ;;  %v405_v19 = vsel %vm401_vm2, %v2625_v9, %v2626_v8  ;;  %v468_v24 = vsel %vm295_vm1, %v2616_v57, %v2630_v12  ;;  %v469_v26 = vsel %vm295_vm1, %v2630_v12, %v2631_v10 }
  0xba   : > { %2753 = vrot.lane.b32.xlu0 %v2752_v13, %s3263_s18  ;;  %2758 = vrot.lane.b32.xlu1 %v2757_v14, %s3263_s18  ;;  %v2634_v20 = vpop.permute.xlu0 %2633  ;;  %v3583_v21 = vpop.permute.xlu1 %2638  ;;  %v413_v23 = vsel %vm304_vm0, %v3433_v1, %v404_v16  ;;  %v414_v29 = vsel %vm304_vm0, %v3559_v52, %v405_v19  ;;  %v415_v30 = vsel %vm304_vm0, %v3447_v6, %v2626_v8 }
  0xbb   : > { %v2635_v27 = vunpack.i.l.bf16 %v2634_v20  ;;  %v2762_v32 = vpack.i.bf16 %v413_v23, %v412_v17  ;;  %v477_v34 = vsel %vm304_vm0, %v3545_v43, %v468_v24  ;;  %v478_v36 = vsel %vm304_vm0, %v3433_v1, %v469_v26 }
  0xbc   : > { %v2640_v39 = vunpack.i.l.bf16 %v3583_v21  ;;  %v2767_v41 = vpack.i.bf16 %v415_v30, %v414_v29  ;;  %v2772_v50 = vpack.i.bf16 %v478_v36, %v477_v34  ;;  %v2636_v54 = vunpack.i.h.bf16 %v2634_v20 }
  0xbd   : > { %v470_v38 = vsel %vm295_vm1, %v2631_v10, %v2635_v27  ;;  %v480_v42 = vsel %vm304_vm0, %v3458_v11, %v2635_v27 }
  0xbe   : > { %355 = vrot.lane.b32.xlu0 %v345_v33, %s3263_s18  ;;  %2763 = vrot.lane.b32.xlu1 %v2762_v32, %s3264_s19  ;;  %v3605_v6 = vpop.permute.xlu0 %2643  ;;  %v2649_v40 = vpop.permute.xlu1 %2648  ;;  %v479_v48 = vsel %vm304_vm0, %v3559_v52, %v470_v38  ;;  %v402_v59 = vsel %vm401_vm2, %v2640_v39, %v2620_v56  ;;  %v467_v12 = vsel %vm295_vm1, %v2636_v54, %v2616_v57 }
  0xbf   : > { %v2646_v44 = vunpack.i.h.bf16 %v3605_v6  ;;  %v2645_v45 = vunpack.i.l.bf16 %v3605_v6  ;;  %v2650_v47 = vunpack.i.l.bf16 %v2649_v40  ;;  %v2651_v49 = vunpack.i.h.bf16 %v2649_v40 }
  0xc0   : > { %v2777_v58 = vpack.i.bf16 %v480_v42, %v479_v48  ;;  %v411_v7 = vsel %vm304_vm0, %v3430_v0, %v402_v59  ;;  %v476_v57 = vsel %vm304_vm0, %v3430_v0, %v467_v12 }
  0xc1   : > { %v533_v51 = vsel %vm295_vm1, %v2645_v45, %v2646_v44  ;;  %v534_v53 = vsel %vm295_vm1, %v2646_v44, %v2650_v47  ;;  %v535_v5 = vsel %vm295_vm1, %v2650_v47, %v2651_v49  ;;  %v545_v2 = vsel %vm304_vm0, %v3467_v15, %v2651_v49 }
  0xc2   : > { %2768 = vrot.lane.b32.xlu0 %v2767_v41, %s3264_s19  ;;  %2773 = vrot.lane.b32.xlu1 %v2772_v50, %s3265_s11  ;;  %v2654_v11 = vpop.permute.xlu0 %2653  ;;  %v2659_v55 = vpop.permute.xlu1 %2658  ;;  %v542_v60 = vsel %vm304_vm0, %v3545_v43, %v533_v51  ;;  %v543_v3 = vsel %vm304_vm0, %v3433_v1, %v534_v53  ;;  %v544_v14 = vsel %vm304_vm0, %v3559_v52, %v535_v5  ;;  %v2641_v49 = vunpack.i.h.bf16 %v3583_v21 }
  0xc3   : > { %v2656_v61 = vunpack.i.h.bf16 %v2654_v11  ;;  %v2655_v62 = vunpack.i.l.bf16 %v2654_v11  ;;  %v2660_v63 = vunpack.i.l.bf16 %v2659_v55  ;;  %v2661_v4 = vunpack.i.h.bf16 %v2659_v55 }
  0xc4   : > { %v2782_v13 = vpack.i.bf16 %v543_v3, %v542_v60  ;;  %v2787_v26 = vpack.i.bf16 %v545_v2, %v544_v14 }
  0xc5   : > { %v598_v8 = vsel %vm295_vm1, %v2655_v62, %v2656_v61  ;;  %v599_v9 = vsel %vm295_vm1, %v2656_v61, %v2660_v63  ;;  %v600_v46 = vsel %vm295_vm1, %v2660_v63, %v2661_v4  ;;  %v610_v32 = vsel %vm304_vm0, %v3475_v18, %v2661_v4 }
  0xc6   : > { %2778 = vrot.lane.b32.xlu0 %v2777_v58, %s3265_s11  ;;  %421 = vrot.lane.b32.xlu1 %v411_v7, %s3264_s19  ;;  %v2664_v56 = vpop.permute.xlu0 %2663  ;;  %v3631_v10 = vpop.permute.xlu1 %2668  ;;  %v607_v16 = vsel %vm304_vm0, %v3545_v43, %v598_v8  ;;  %v608_v17 = vsel %vm304_vm0, %v3433_v1, %v599_v9  ;;  %v609_v30 = vsel %vm304_vm0, %v3559_v52, %v600_v46  ;;  %s3273_s19 = smov 46  }
  0xc7   : > { %v2671_v19 = vunpack.i.h.bf16 %v3631_v10  ;;  %v2670_v20 = vunpack.i.l.bf16 %v3631_v10  ;;  %v2665_v23 = vunpack.i.l.bf16 %v2664_v56  ;;  %v2792_v27 = vpack.i.bf16 %v608_v17, %v607_v16 }
  0xc8   : > { %v2666_v36 = vunpack.i.h.bf16 %v2664_v56  ;;  %v2797_v44 = vpack.i.bf16 %v610_v32, %v609_v30 }
  0xc9   : > { %v663_v34 = vsel %vm295_vm1, %v2670_v20, %v2671_v19  ;;  %v532_v18 = vsel %vm295_vm1, %v2665_v23, %v2645_v45 }
  0xca   : > { %486 = vrot.lane.b32.xlu0 %v476_v57, %s3265_s11  ;;  %2783 = vrot.lane.b32.xlu1 %v2782_v13, %s3266_s13  ;;  %v2674_v15 = vpop.permute.xlu0 %2673  ;;  %v2679_v24 = vpop.permute.xlu1 %2678  ;;  %v672_v47 = vsel %vm304_vm0, %v3545_v43, %v663_v34  ;;  %v541_v53 = vsel %vm304_vm0, %v3430_v0, %v532_v18  ;;  %v597_v54 = vsel %vm295_vm1, %v2666_v36, %v2655_v62 }
  0xcb   : > { %v2675_v29 = vunpack.i.l.bf16 %v2674_v15  ;;  %v2676_v33 = vunpack.i.h.bf16 %v2674_v15  ;;  %v2681_v39 = vunpack.i.h.bf16 %v2679_v24  ;;  %v2680_v40 = vunpack.i.l.bf16 %v2679_v24 }
  0xcc   : > { %v606_v3 = vsel %vm304_vm0, %v3430_v0, %v597_v54 }
  0xcd   : > { %v664_v38 = vsel %vm295_vm1, %v2671_v19, %v2675_v29  ;;  %v665_v51 = vsel %vm295_vm1, %v2675_v29, %v2676_v33  ;;  %v728_v11 = vsel %vm401_vm2, %v2641_v49, %v2680_v40  ;;  %v729_v55 = vsel %vm401_vm2, %v2680_v40, %v2681_v39 }
  0xce   : > { %2788 = vrot.lane.b32.xlu0 %v2787_v26, %s3266_s13  ;;  %2793 = vrot.lane.b32.xlu1 %v2792_v27, %s3267_s10  ;;  %v2684_v41 = vpop.permute.xlu0 %2683  ;;  %v3661_v42 = vpop.permute.xlu1 %2688  ;;  %v673_v48 = vsel %vm304_vm0, %v3433_v1, %v664_v38  ;;  %v674_v21 = vsel %vm304_vm0, %v3559_v52, %v665_v51  ;;  %v675_v59 = vsel %vm304_vm0, %v3486_v22, %v2676_v33 }
  0xcf   : > { %v2685_v50 = vunpack.i.l.bf16 %v2684_v41  ;;  %v2802_v6 = vpack.i.bf16 %v673_v48, %v672_v47  ;;  %v2691_v60 = vunpack.i.h.bf16 %v3661_v42  ;;  %v737_v4 = vsel %vm304_vm0, %v3545_v43, %v728_v11 }
  0xd0   : > { %v738_v5 = vsel %vm304_vm0, %v3433_v1, %v729_v55  ;;  %v2690_v7 = vunpack.i.l.bf16 %v3661_v42  ;;  %v2807_v22 = vpack.i.bf16 %v675_v59, %v674_v21  ;;  %v2686_v46 = vunpack.i.h.bf16 %v2684_v41 }
  0xd1   : > { %v730_v63 = vsel %vm401_vm2, %v2681_v39, %v2685_v50  ;;  %v740_v9 = vsel %vm304_vm0, %v3495_v25, %v2685_v50  ;;  %v2812_v2 = vpack.i.bf16 %v738_v5, %v737_v4 }
  0xd2   : > { %2798 = vrot.lane.b32.xlu0 %v2797_v44, %s3267_s10  ;;  %551 = vrot.lane.b32.xlu1 %v541_v53, %s3266_s13  ;;  %v2694_v45 = vpop.permute.xlu0 %2693  ;;  %v3679_v58 = vpop.permute.xlu1 %2698  ;;  %v739_v14 = vsel %vm304_vm0, %v3559_v52, %v730_v63  ;;  %v662_v23 = vsel %vm295_vm1, %v2690_v7, %v2670_v20  ;;  %v727_v20 = vsel %vm401_vm2, %v2686_v46, %v2641_v49  ;;  %s3280_s13 = smov 38  }
  0xd3   : > { %v2696_v61 = vunpack.i.h.bf16 %v2694_v45  ;;  %v2695_v62 = vunpack.i.l.bf16 %v2694_v45  ;;  %v2701_v56 = vunpack.i.h.bf16 %v3679_v58  ;;  %v2700_v12 = vunpack.i.l.bf16 %v3679_v58 }
  0xd4   : > { %v2817_v25 = vpack.i.bf16 %v740_v9, %v739_v14  ;;  %v671_v10 = vsel %vm304_vm0, %v3430_v0, %v662_v23 }
  0xd5   : > { %v793_v17 = vsel %vm295_vm1, %v2691_v60, %v2695_v62  ;;  %v794_v19 = vsel %vm295_vm1, %v2695_v62, %v2696_v61  ;;  %v795_v27 = vsel %vm295_vm1, %v2696_v61, %v2700_v12  ;;  %v805_v34 = vsel %vm304_vm0, %v3503_v28, %v2700_v12 }
  0xd6   : > { %616 = vrot.lane.b32.xlu0 %v606_v3, %s3267_s10  ;;  %2803 = vrot.lane.b32.xlu1 %v2802_v6, %s3268_s12  ;;  %v2704_v8 = vpop.permute.xlu0 %2703  ;;  %v2709_v57 = vpop.permute.xlu1 %2708  ;;  %v802_v24 = vsel %vm304_vm0, %v3545_v43, %v793_v17  ;;  %v803_v26 = vsel %vm304_vm0, %v3433_v1, %v794_v19  ;;  %v804_v38 = vsel %vm304_vm0, %v3559_v52, %v795_v27 }
  0xd7   : > { %v2705_v13 = vunpack.i.l.bf16 %v2704_v8  ;;  %v2706_v16 = vunpack.i.h.bf16 %v2704_v8  ;;  %v2710_v30 = vunpack.i.l.bf16 %v2709_v57  ;;  %v2822_v36 = vpack.i.bf16 %v803_v26, %v802_v24 }
  0xd8   : > { %v736_v28 = vsel %vm304_vm0, %v3430_v0, %v727_v20  ;;  %v2711_v49 = vunpack.i.h.bf16 %v2709_v57  ;;  %v2827_v50 = vpack.i.bf16 %v805_v34, %v804_v38  ;;  %v3274_v26 = vmov 0.0  }
  0xd9   : > { %v858_v29 = vsel %vm295_vm1, %v2701_v56, %v2705_v13  ;;  %v859_v32 = vsel %vm295_vm1, %v2705_v13, %v2706_v16  ;;  %v860_v47 = vsel %vm295_vm1, %v2706_v16, %v2710_v30  ;;  %v870_v6 = vsel %vm304_vm0, %v3511_v31, %v2710_v30  ;;  %1198 = vmatprep.mubr.f32.mxu0 %v3274_v26 }
  0xda   : > { %2808 = vrot.lane.b32.xlu0 %v2807_v22, %s3268_s12  ;;  %2813 = vrot.lane.b32.xlu1 %v2812_v2, %s3269_s14  ;;  %v3710_v15 = vpop.permute.xlu0 %2713  ;;  %v2719_v33 = vpop.permute.xlu1 %2718  ;;  %v867_v39 = vsel %vm304_vm0, %v3545_v43, %v858_v29  ;;  %v868_v18 = vsel %vm304_vm0, %v3433_v1, %v859_v32  ;;  %v869_v54 = vsel %vm304_vm0, %v3559_v52, %v860_v47  ;;  %v1041_v29 = vsel %vm304_vm0, %v3559_v52, 0.0 }
  0xdb   : > { %v2716_v40 = vunpack.i.h.bf16 %v3710_v15  ;;  %v2721_v41 = vunpack.i.h.bf16 %v2719_v33  ;;  %v2720_v44 = vunpack.i.l.bf16 %v2719_v33  ;;  %v2832_v51 = vpack.i.bf16 %v868_v18, %v867_v39  ;;  %1306 = vst [vmem:[#allocation3] sm:$0xf] %v3274_v26  ;;  %1307 = vst [vmem:[#allocation3 + $0x14] sm:$0xf] %v3274_v26  ;;  %1269 = vmatprep.mubr.f32.mxu1 %v3274_v26  ;;  %v1031_v33 = vld [vmem:[%s3423_s29 + $0x10] sm:$0xf] }
  0xdc   : > { %v2715_v62 = vunpack.i.l.bf16 %v3710_v15  ;;  %v2837_v63 = vpack.i.bf16 %v870_v6, %v869_v54  ;;  %v792_v31 = vsel %vm295_vm1, %v2711_v49, %v2691_v60  ;;  %v3275_v32 = vmov 0   ;;  %s3282_s29 = smov 19  }
  0xdd   : > { %v923_v45 = vsel %vm295_vm1, %v2716_v40, %v2720_v44  ;;  %v924_v11 = vsel %vm295_vm1, %v2720_v44, %v2721_v41  ;;  %v801_v12 = vsel %vm304_vm0, %v3430_v0, %v792_v31  ;;  %2862 = vset.pattern.permute.xlu0 %v3275_v32  ;;  %v1038_v20 = vsel %vm304_vm0, %v3430_v0, 0.0 }
  0xde   : > { %2818 = vrot.lane.b32.xlu0 %v2817_v25, %s3269_s14  ;;  %681 = vrot.lane.b32.xlu1 %v671_v10, %s3268_s12  ;;  %v3737_v48 = vpop.permute.xlu0 %2723  ;;  %v2729_v53 = vpop.permute.xlu1 %2728  ;;  %v932_v4 = vsel %vm304_vm0, %v3545_v43, %v923_v45  ;;  %v933_v5 = vsel %vm304_vm0, %v3433_v1, %v924_v11  ;;  %v857_v42 = vsel %vm295_vm1, %v2715_v62, %v2701_v56  ;;  %v1040_v10 = vsel %vm304_vm0, %v3433_v1, 0.0 }
  0xdf   : > { %v2726_v55 = vunpack.i.h.bf16 %v3737_v48  ;;  %v2725_v21 = vunpack.i.l.bf16 %v3737_v48  ;;  %v2731_v59 = vunpack.i.h.bf16 %v2729_v53  ;;  %v2730_v61 = vunpack.i.l.bf16 %v2729_v53 }
  0xe0   : > { %v2842_v60 = vpack.i.bf16 %v933_v5, %v932_v4  ;;  %v866_v58 = vsel %vm304_vm0, %v3430_v0, %v857_v42  ;;  %v1042_v34 = vsel %vm304_vm0, %v1031_v33, 0.0 }
  0xe1   : > { %v925_v22 = vsel %vm295_vm1, %v2721_v41, %v2725_v21  ;;  %v988_v8 = vsel %vm295_vm1, %v2726_v55, %v2730_v61  ;;  %v989_v9 = vsel %vm295_vm1, %v2730_v61, %v2731_v59  ;;  %v935_v14 = vsel %vm304_vm0, %v3522_v35, %v2725_v21 }
  0xe2   : > { %746 = vrot.lane.b32.xlu0 %v736_v28, %s3269_s14  ;;  %2823 = vrot.lane.b32.xlu1 %v2822_v36, %s3270_s17  ;;  %v2734_v3 = vpop.permute.xlu0 %2733  ;;  %v934_v13 = vsel %vm304_vm0, %v3559_v52, %v925_v22  ;;  %v997_v2 = vsel %vm304_vm0, %v3545_v43, %v988_v8  ;;  %v998_v16 = vsel %vm304_vm0, %v3433_v1, %v989_v9  ;;  %v2739_v57 = vpop.permute.xlu1 %2738  ;;  %v1124_v36 = vld [vmem:[%s4508_s2] sm:$0xf]  ;;  %s3281_s14 = smov 21  }
  0xe3   : > { %v2735_v7 = vunpack.i.l.bf16 %v2734_v3  ;;  %v2736_v19 = vunpack.i.h.bf16 %v2734_v3  ;;  %v2847_v56 = vpack.i.bf16 %v935_v14, %v934_v13  ;;  %v2852_v46 = vpack.i.bf16 %v998_v16, %v997_v2 }
  0xe4   : > { %v2740_v23 = vunpack.i.l.bf16 %v2739_v57  ;;  %v2741_v41 = vunpack.i.h.bf16 %v2739_v57 }
  0xe5   : > { %v990_v17 = vsel %vm295_vm1, %v2731_v59, %v2735_v7  ;;  %v1000_v25 = vsel %vm304_vm0, %v3529_v37, %v2735_v7  ;;  %v922_v24 = vsel %vm295_vm1, %v2736_v19, %v2716_v40 }
  0xe6   : > { %2828 = vrot.lane.b32.xlu0 %v2827_v50, %s3270_s17  ;;  %2833 = vrot.lane.b32.xlu1 %v2832_v51, %s3271_s26  ;;  %v999_v35 = vsel %vm304_vm0, %v3559_v52, %v990_v17  ;;  %v931_v37 = vsel %vm304_vm0, %v3430_v0, %v922_v24  ;;  %v987_v27 = vsel %vm295_vm1, %v2740_v23, %v2726_v55  ;;  %v2749_v38 = vpop.permute.xlu1 %2748  ;;  %v2744_v39 = vpop.permute.xlu0 %2743 }
  0xe7   : > { %v2857_v15 = vpack.i.bf16 %v1000_v25, %v999_v35  ;;  %v996_v30 = vsel %vm304_vm0, %v3430_v0, %v987_v27  ;;  %v2746_v44 = vunpack.i.h.bf16 %v2744_v39  ;;  %v2745_v18 = vunpack.i.l.bf16 %v2744_v39 }
  0xe8   : > { %v2750_v47 = vunpack.i.l.bf16 %v2749_v38  ;;  %v2751_v28 = vunpack.i.h.bf16 %v2749_v38 }
  0xe9   : > { %v297_v48 = vsel %vm295_vm1, %v2741_v41, %v2745_v18  ;;  %v298_v53 = vsel %vm295_vm1, %v2745_v18, %v2746_v44 }
  0xea   : > { %2838 = vrot.lane.b32.xlu0 %v2837_v63, %s3271_s26  ;;  %811 = vrot.lane.b32.xlu1 %v801_v12, %s3270_s17  ;;  %v3803_v40 = vpop.permute.xlu1 %1050  ;;  %v299_v49 = vsel %vm295_vm1, %v2746_v44, %v2750_v47  ;;  %v306_v55 = vsel %vm304_vm0, %v3545_v43, %v297_v48  ;;  %v296_v59 = vsel %vm295_vm1, %v2751_v28, %v2741_v41  ;;  %s2422_s17 = sshll.u32 %s3419_s20, 4 }
  0xeb   : > { %v308_v21 = vsel %vm304_vm0, %v3559_v52, %v299_v49  ;;  %v307_v63 = vsel %vm304_vm0, %v3433_v1, %v298_v53  ;;  %v305_v9 = vsel %vm304_vm0, %v3430_v0, %v296_v59 }
  0xee   : > { %876 = vrot.lane.b32.xlu0 %v866_v58, %s3271_s26  ;;  %2843 = vrot.lane.b32.xlu1 %v2842_v60, %s3272_s28  ;;  %s2432_s26 = sshll.u32 %s3341_s25, 8  ;;  %s3284_s25 = smov [#allocation7]  }
  0xf2   : > { %2848 = vrot.lane.b32.xlu0 %v2847_v56, %s3272_s28  ;;  %2853 = vrot.lane.b32.xlu1 %v2852_v46, %s3273_s19 }
  0xf6   : > { %2858 = vrot.lane.b32.xlu0 %v2857_v15, %s3273_s19  ;;  %941 = vrot.lane.b32.xlu1 %v931_v37, %s3272_s28  ;;  %s3278_s28 = smov 40  }
  0xfa   : > { %1006 = vrot.lane.b32.xlu0 %v996_v30, %s3273_s19  ;;  %1054 = vrot.lane.b32.xlu1 %v1041_v29, %s3262_s16  ;;  %s3279_s19 = smov 90  }
  0xfe   : > { %1052 = vrot.lane.b32.xlu0 %v1040_v10, %s3262_s16  ;;  %1048 = vrot.lane.b32.xlu1 %v1038_v20, %s3262_s16 }
 0x102   : > { %1056 = vrot.lane.b32.xlu0 %v1042_v34, %s3262_s16  ;;  %s3283_s16 = smov 2  }
 0x106   : > { %1127 = vperm.xlu0 %2862, %v1124_v36  }
 0x12c   : > { %v2754_v50 = vpop.permute.xlu0 %2753  ;;  %v2759_v51 = vpop.permute.xlu1 %2758 }
 0x12d   : > { %v2756_v54 = vunpack.i.h.bf16 %v2754_v50  ;;  %v2755_v6 = vunpack.i.l.bf16 %v2754_v50  ;;  %v2761_v45 = vunpack.i.h.bf16 %v2759_v51  ;;  %v2760_v11 = vunpack.i.l.bf16 %v2759_v51 }
 0x12f   : > { %v367_v61 = vsel %vm365_vm3, %v2755_v6, %v2756_v54  ;;  %v369_v62 = vsel %vm365_vm3, %v2760_v11, %v2761_v45  ;;  %v368_v31 = vsel %vm365_vm3, %v2756_v54, %v2760_v11 }
 0x130   : > { %v356_v3 = vpop.permute.xlu0 %355  ;;  %v2764_v4 = vpop.permute.xlu1 %2763  ;;  %v2433_v5 = vpack.c.bf16 %v367_v61, %v306_v55  ;;  %v2457_v7 = vpack.c.bf16 %v369_v62, %v308_v21  ;;  %v2459_v22 = vpack.c.bf16 %v368_v31, %v307_v63 }
 0x131   : > { %v366_v43 = vsel %vm365_vm3, %v356_v3, %v2755_v6  ;;  %v2766_v8 = vunpack.i.h.bf16 %v2764_v4  ;;  %v2765_v52 = vunpack.i.l.bf16 %v2764_v4 }
 0x132   : > { %2434 = vmatprep.subr.bf16.mxu0 %v2433_v5  ;;  %2458 = vmatprep.subr.bf16.mxu1 %v2457_v7  ;;  %v2435_v12 = vpack.c.bf16 %v366_v43, %v305_v9 }
 0x133   : > { %2460 = vmatpush1.bf16.msra.mxu1 %v2459_v22  ;;  %v433_v14 = vsel %vm431_vm4, %v2765_v52, %v2766_v8 }
 0x134   : > { %v2769_v1 = vpop.permute.xlu0 %2768  ;;  %v2774_v42 = vpop.permute.xlu1 %2773  ;;  %2436 = vmatpush1.bf16.msra.mxu0 %v2435_v12 }
 0x135   : > { %v2776_v60 = vunpack.i.h.bf16 %v2774_v42  ;;  %v2775_v13 = vunpack.i.l.bf16 %v2774_v42  ;;  %v2771_v2 = vunpack.i.h.bf16 %v2769_v1  ;;  %v2770_v16 = vunpack.i.l.bf16 %v2769_v1 }
 0x137   : > { %v498_v17 = vsel %vm496_vm5, %v2775_v13, %v2776_v60  ;;  %v435_v57 = vsel %vm431_vm4, %v2770_v16, %v2771_v2  ;;  %v434_v25 = vsel %vm431_vm4, %v2766_v8, %v2770_v16 }
 0x138   : > { %v2779_v58 = vpop.permute.xlu0 %2778  ;;  %v422_v19 = vpop.permute.xlu1 %421  ;;  %v2437_v0 = vpack.c.bf16 %v498_v17, %v433_v14 }
 0x139   : > { %v2781_v56 = vunpack.i.h.bf16 %v2779_v58  ;;  %v2780_v46 = vunpack.i.l.bf16 %v2779_v58  ;;  %v432_v29 = vsel %vm431_vm4, %v422_v19, %v2765_v52  ;;  %vm1435_vm4 = vcmask 326656  }
 0x13a   : > { %2438 = vmatprep.subr.bf16.mxu0 %v2437_v0 }
 0x13b   : > { %v500_v35 = vsel %vm496_vm5, %v2780_v46, %v2781_v56  ;;  %v499_v23 = vsel %vm496_vm5, %v2776_v60, %v2780_v46 }
 0x13c   : > { %v487_v15 = vpop.permute.xlu0 %486  ;;  %v2784_v24 = vpop.permute.xlu1 %2783  ;;  %v2461_v37 = vpack.c.bf16 %v500_v35, %v435_v57  ;;  %v2463_v27 = vpack.c.bf16 %v499_v23, %v434_v25 }
 0x13d   : > { %v497_v30 = vsel %vm496_vm5, %v487_v15, %v2775_v13  ;;  %v2786_v32 = vunpack.i.h.bf16 %v2784_v24  ;;  %v2785_v10 = vunpack.i.l.bf16 %v2784_v24 }
 0x13e   : > { %v2439_v20 = vpack.c.bf16 %v497_v30, %v432_v29  ;;  %2462 = vmatprep.subr.bf16.mxu1 %v2461_v37 }
 0x13f   : > { %2464 = vmatpush1.bf16.msra.mxu1 %v2463_v27  ;;  %v563_v39 = vsel %vm561_vm6, %v2785_v10, %v2786_v32 }
 0x140   : > { %v2789_v33 = vpop.permute.xlu0 %2788  ;;  %v2794_v34 = vpop.permute.xlu1 %2793  ;;  %2440 = vmatpush1.bf16.msra.mxu0 %v2439_v20 }
 0x141   : > { %v2796_v36 = vunpack.i.h.bf16 %v2794_v34  ;;  %v2795_v38 = vunpack.i.l.bf16 %v2794_v34  ;;  %v2791_v41 = vunpack.i.h.bf16 %v2789_v33  ;;  %v2790_v44 = vunpack.i.l.bf16 %v2789_v33 }
 0x143   : > { %v628_v18 = vsel %vm626_vm7, %v2795_v38, %v2796_v36  ;;  %v565_v51 = vsel %vm561_vm6, %v2790_v44, %v2791_v41  ;;  %v564_v54 = vsel %vm561_vm6, %v2786_v32, %v2790_v44 }
 0x144   : > { %v2799_v47 = vpop.permute.xlu0 %2798  ;;  %v552_v28 = vpop.permute.xlu1 %551  ;;  %v2441_v48 = vpack.c.bf16 %v628_v18, %v563_v39 }
 0x145   : > { %v2801_v49 = vunpack.i.h.bf16 %v2799_v47  ;;  %v2800_v50 = vunpack.i.l.bf16 %v2799_v47  ;;  %v562_v59 = vsel %vm561_vm6, %v552_v28, %v2785_v10  ;;  %vm1500_vm6 = vcmask 310272  }
 0x146   : > { %2442 = vmatprep.subr.bf16.mxu0 %v2441_v48 }
 0x147   : > { %v630_v53 = vsel %vm626_vm7, %v2800_v50, %v2801_v49  ;;  %v629_v6 = vsel %vm626_vm7, %v2796_v36, %v2800_v50 }
 0x148   : > { %v617_v45 = vpop.permute.xlu0 %616  ;;  %v2804_v11 = vpop.permute.xlu1 %2803  ;;  %v2465_v55 = vpack.c.bf16 %v630_v53, %v565_v51  ;;  %v2467_v21 = vpack.c.bf16 %v629_v6, %v564_v54 }
 0x149   : > { %v627_v61 = vsel %vm626_vm7, %v617_v45, %v2795_v38  ;;  %v2806_v62 = vunpack.i.h.bf16 %v2804_v11  ;;  %v2805_v63 = vunpack.i.l.bf16 %v2804_v11 }
 0x14a   : > { %v2443_v31 = vpack.c.bf16 %v627_v61, %v562_v59  ;;  %2466 = vmatprep.subr.bf16.mxu1 %v2465_v55 }
 0x14b   : > { %2468 = vmatpush1.bf16.msra.mxu1 %v2467_v21  ;;  %v693_v22 = vsel %vm691_vm8, %v2805_v63, %v2806_v62 }
 0x14c   : > { %v2809_v3 = vpop.permute.xlu0 %2808  ;;  %v2814_v4 = vpop.permute.xlu1 %2813  ;;  %2444 = vmatpush1.bf16.msra.mxu0 %v2443_v31 }
 0x14d   : > { %v2816_v5 = vunpack.i.h.bf16 %v2814_v4  ;;  %v2815_v7 = vunpack.i.l.bf16 %v2814_v4  ;;  %v2811_v43 = vunpack.i.h.bf16 %v2809_v3  ;;  %v2810_v8 = vunpack.i.l.bf16 %v2809_v3 }
 0x14f   : > { %v758_v52 = vsel %vm756_vm9, %v2815_v7, %v2816_v5  ;;  %v695_v13 = vsel %vm691_vm8, %v2810_v8, %v2811_v43  ;;  %v694_v2 = vsel %vm691_vm8, %v2806_v62, %v2810_v8 }
 0x150   : > { %v2819_v9 = vpop.permute.xlu0 %2818  ;;  %v682_v12 = vpop.permute.xlu1 %681  ;;  %v2445_v1 = vpack.c.bf16 %v758_v52, %v693_v22 }
 0x151   : > { %v2821_v42 = vunpack.i.h.bf16 %v2819_v9  ;;  %v2820_v60 = vunpack.i.l.bf16 %v2819_v9  ;;  %v692_v56 = vsel %vm691_vm8, %v682_v12, %v2805_v63 }
 0x152   : > { %2446 = vmatprep.subr.bf16.mxu0 %v2445_v1 }
 0x153   : > { %v760_v14 = vsel %vm756_vm9, %v2820_v60, %v2821_v42  ;;  %v759_v16 = vsel %vm756_vm9, %v2816_v5, %v2820_v60 }
 0x154   : > { %v747_v17 = vpop.permute.xlu0 %746  ;;  %v2824_v58 = vpop.permute.xlu1 %2823  ;;  %v2469_v19 = vpack.c.bf16 %v760_v14, %v695_v13  ;;  %v2471_v0 = vpack.c.bf16 %v759_v16, %v694_v2 }
 0x155   : > { %v757_v46 = vsel %vm756_vm9, %v747_v17, %v2815_v7  ;;  %v2826_v35 = vunpack.i.h.bf16 %v2824_v58  ;;  %v2825_v25 = vunpack.i.l.bf16 %v2824_v58  ;;  %v1071_v17 = vld [vmem:[%s4507_s1] sm:$0xf]  ;;  %vm1565_vm9 = vcmask 171008  }
 0x156   : > { %v2447_v57 = vpack.c.bf16 %v757_v46, %v692_v56  ;;  %2470 = vmatprep.subr.bf16.mxu1 %v2469_v19  ;;  %v1282_v46 = vlaneseq }
 0x157   : > { %2472 = vmatpush1.bf16.msra.mxu1 %v2471_v0  ;;  %v823_v30 = vsel %vm821_vm10, %v2825_v25, %v2826_v35 }
 0x158   : > { %v2829_v23 = vpop.permute.xlu0 %2828  ;;  %v2834_v15 = vpop.permute.xlu1 %2833  ;;  %2448 = vmatpush1.bf16.msra.mxu0 %v2447_v57  ;;  %v1283_v57 = vshrl.u32 %v1282_v46, 7 }
 0x159   : > { %v2836_v24 = vunpack.i.h.bf16 %v2834_v15  ;;  %v2835_v37 = vunpack.i.l.bf16 %v2834_v15  ;;  %v2831_v27 = vunpack.i.h.bf16 %v2829_v23  ;;  %v2830_v29 = vunpack.i.l.bf16 %v2829_v23 }
 0x15a   : > { %v1288_v23 = vsub.s32 1, %v1283_v57 }
 0x15b   : > { %v888_v32 = vsel %vm886_vm11, %v2835_v37, %v2836_v24  ;;  %v825_v38 = vsel %vm821_vm10, %v2830_v29, %v2831_v27  ;;  %v824_v41 = vsel %vm821_vm10, %v2826_v35, %v2830_v29  ;;  %v1284_v35 = vsub.s32 0, %v1283_v57 }
 0x15c   : > { %v2839_v10 = vpop.permute.xlu0 %2838  ;;  %v812_v20 = vpop.permute.xlu1 %811  ;;  %v2449_v33 = vpack.c.bf16 %v888_v32, %v823_v30  ;;  %v1296_v30 = vsub.s32 3, %v1283_v57 }
 0x15d   : > { %v2841_v34 = vunpack.i.h.bf16 %v2839_v10  ;;  %v2840_v36 = vunpack.i.l.bf16 %v2839_v10  ;;  %v822_v49 = vsel %vm821_vm10, %v812_v20, %v2825_v25  ;;  %vm1630_vm10 = vcmask 154624  }
 0x15e   : > { %2450 = vmatprep.subr.bf16.mxu0 %v2449_v33 }
 0x15f   : > { %v890_v39 = vsel %vm886_vm11, %v2840_v36, %v2841_v34  ;;  %v889_v44 = vsel %vm886_vm11, %v2836_v24, %v2840_v36  ;;  %v1292_v24 = vsub.s32 2, %v1283_v57  ;;  %v3875_v34 = vld [vmem:[#allocation3 + $0x14] sm:$0xf] }
 0x160   : > { %v877_v18 = vpop.permute.xlu0 %876  ;;  %v2844_v47 = vpop.permute.xlu1 %2843  ;;  %v2473_v28 = vpack.c.bf16 %v890_v39, %v825_v38  ;;  %v2475_v48 = vpack.c.bf16 %v889_v44, %v824_v41  ;;  %v3956_v57 = vld [vmem:[#allocation3 + $0x14] sm:$0xf] }
 0x161   : > { %v887_v50 = vsel %vm886_vm11, %v877_v18, %v2835_v37  ;;  %v2846_v53 = vunpack.i.h.bf16 %v2844_v47  ;;  %v2845_v54 = vunpack.i.l.bf16 %v2844_v47  ;;  %vm1695_vm11 = vcmask 15360  }
 0x162   : > { %v2451_v51 = vpack.c.bf16 %v887_v50, %v822_v49  ;;  %2474 = vmatprep.subr.bf16.mxu1 %v2473_v28  ;;  %v1827_v50 = vcombine.low %v3875_v34, %v3875_v34 }
 0x163   : > { %2476 = vmatpush1.bf16.msra.mxu1 %v2475_v48  ;;  %v953_v61 = vsel %vm951_vm12, %v2845_v54, %v2846_v53 }
 0x164   : > { %v2849_v6 = vpop.permute.xlu0 %2848  ;;  %v2854_v45 = vpop.permute.xlu1 %2853  ;;  %2452 = vmatpush1.bf16.msra.mxu0 %v2451_v51 }
 0x165   : > { %v2856_v11 = vunpack.i.h.bf16 %v2854_v45  ;;  %v2855_v55 = vunpack.i.l.bf16 %v2854_v45  ;;  %v2851_v21 = vunpack.i.h.bf16 %v2849_v6  ;;  %v2850_v59 = vunpack.i.l.bf16 %v2849_v6 }
 0x167   : > { %v1018_v62 = vsel %vm1016_vm13, %v2855_v55, %v2856_v11  ;;  %v955_v7 = vsel %vm951_vm12, %v2850_v59, %v2851_v21  ;;  %v954_v43 = vsel %vm951_vm12, %v2846_v53, %v2850_v59 }
 0x168   : > { %v2859_v63 = vpop.permute.xlu0 %2858  ;;  %v942_v31 = vpop.permute.xlu1 %941  ;;  %v2453_v3 = vpack.c.bf16 %v1018_v62, %v953_v61 }
 0x169   : > { %v2861_v4 = vunpack.i.h.bf16 %v2859_v63  ;;  %v2860_v5 = vunpack.i.l.bf16 %v2859_v63  ;;  %v952_v42 = vsel %vm951_vm12, %v942_v31, %v2845_v54  ;;  %vm1867_vm12 = vcmask 891904  }
 0x16a   : > { %2454 = vmatprep.subr.bf16.mxu0 %v2453_v3 }
 0x16b   : > { %v1020_v22 = vsel %vm1016_vm13, %v2860_v5, %v2861_v4  ;;  %v1019_v8 = vsel %vm1016_vm13, %v2856_v11, %v2860_v5 }
 0x16c   : > { %v1007_v52 = vpop.permute.xlu0 %1006  ;;  %v1055_v9 = vpop.permute.xlu1 %1054  ;;  %v2477_v12 = vpack.c.bf16 %v1020_v22, %v955_v7  ;;  %v2479_v1 = vpack.c.bf16 %v1019_v8, %v954_v43 }
 0x16d   : > { %v1017_v60 = vsel %vm1016_vm13, %v1007_v52, %v2855_v55  ;;  %vm1996_vm13 = vcmask 736256  }
 0x16e   : > { %v2455_v13 = vpack.c.bf16 %v1017_v60, %v952_v42  ;;  %2478 = vmatprep.subr.bf16.mxu1 %v2477_v12 }
 0x16f   : > { %2480 = vmatpush1.bf16.msra.mxu1 %v2479_v1 }
 0x170   : > { %v1053_v14 = vpop.permute.xlu0 %1052  ;;  %v1049_v2 = vpop.permute.xlu1 %1048  ;;  %2456 = vmatpush1.bf16.msra.mxu0 %v2455_v13 }
 0x171   : > { %v1060_v16 = vsel %vm1058_vm14, %v3803_v40, %v1053_v14  ;;  %v1059_v58 = vsel %vm1058_vm14, %v1049_v2, %v3803_v40  ;;  %v1061_v56 = vsel %vm1058_vm14, %v1053_v14, %v1055_v9  ;;  %v1280_v40 = vld [vmem:[%s4511_s5] sm:$0xf] }
 0x172   : > { %1158 = vmatprep.subr.mxu0 %v1060_v16  ;;  %v1285_v29 = vrot.slane %v1280_v40, %v1284_v35  ;;  %v1289_v10 = vrot.slane %v1280_v40, %v1288_v23  ;;  %v1293_v39 = vrot.slane %v1280_v40, %v1292_v24  ;;  %v1297_v47 = vrot.slane %v1280_v40, %v1296_v30  ;;  %v3970_v24 = vld [vmem:[#allocation3 + $0x14] sm:$0xf] }
 0x173   : > { %v1763_v35 = vcombine.low %v3956_v57, %v3956_v57 }
 0x174   : > { %v1057_v19 = vpop.permute.xlu0 %1056  ;;  %1159 = vmatpush1.msra.mxu0 %v1059_v58 }
 0x175   : > { %2423 = vmatmul.mubr.msk.f32.vlgmr.msra.gmra.mrb[0].mxu0 %vm1130_vm15, %v1071_v17  ;;  %v1062_v0 = vsel %vm1058_vm14, %v1055_v9, %v1057_v19 }
 0x176   : > { %1229 = vmatprep.subr.mxu1 %v1062_v0  ;;  %2240 = vmatprep.mubr.f32.mxu0 %v3274_v26 }
 0x177   : > { %1230 = vmatpush1.msra.mxu1 %v1061_v56 }
 0x178   : > { %2424 = vmatmul.mubr.msk.f32.vlgmr.msra.gmra.mrb[0].mxu1 %vm1130_vm15, %v1071_v17 }
 0x179   : > { %2311 = vmatprep.mubr.f32.mxu1 %v3274_v26  ;;  %v3873_v26 = vld [vmem:[#allocation3 + $0x14] sm:$0xf] }
 0x17a   : > { %v1956_v49 = vcombine.low %v3873_v26, %v3873_v26 }
 0x185   : > { %v1128_v25 = vpop.permute.xlu0 %1127 }
 0x248   : > { %v1200_v15 = vpop.f32.mrb[0].mxu0 }
 0x249   : > { %v1201_v37 = vadd.f32 %v1200_v15, %v1128_v25  ;;  %v1202_v27 = vpop.f32.mrb[1].mxu0 }
 0x24a   : > { %v1203_v32 = vadd.f32 %v1202_v27, %v1128_v25 }
 0x24b   : > { %v1276_v20 = vmax.f32 %v1201_v37, 0.0  ;;  %v1271_v33 = vpop.f32.mrb[0].mxu1 }
 0x24c   : > { %v1277_v36 = vmax.f32 %v1203_v32, 0.0  ;;  %v1272_v38 = vadd.f32 %v1271_v33, %v1128_v25  ;;  %v1273_v41 = vpop.f32.mrb[1].mxu1  ;;  %v3154_v32 = vld [vmem:[#allocation3 + $0x14] ss:$0 sps:$4 sm:$0xff]  }
 0x24d   : > { %v3877_v44 = vmul.f32 %v1285_v29, %v1276_v20  ;;  %v1274_v18 = vadd.f32 %v1273_v41, %v1128_v25  ;;  %v3962_v25 = vld [vmem:[#allocation3 + $0x14] sm:$0xf]  ;;  %v2021_v29 = vcombine.low %v3970_v24, %v3970_v24 }
 0x24e   : > { %v3879_v28 = vmul.f32 %v1289_v10, %v1277_v36  ;;  %v1278_v48 = vmax.f32 %v1272_v38, 0.0  ;;  %v1892_v15 = vcombine.low %v3962_v25, %v3962_v25 }
 0x24f   : > { %v1279_v51 = vmax.f32 %v1274_v18, 0.0  ;;  %v3158_v40 = vcombine.low %v3877_v44, %v3877_v44 }
 0x250   : > { %v3887_v53 = vcombine.low %v3877_v44, %v3879_v28  ;;  %v1304_v54 = vmul.f32 %v1293_v39, %v1278_v48  ;;  %v3986_v20 = vcombine.low %v3879_v28, %v3879_v28 }
 0x251   : > { %v3889_v6 = vmul.f32 %v1297_v47, %v1279_v51  ;;  %v2958_v23 = vpack.i.bf16 %v3158_v40, %v1763_v35  ;;  %v2973_v37 = vpack.i.bf16 %v3158_v40, %v1892_v15  ;;  %v2993_v30 = vpack.i.bf16 %v3158_v40, %v2021_v29 }
 0x252   : > { %1316 = vst [vmem:[#allocation3 + $0x4] sm:$0xff] %v3887_v53  ;;  %v2868_v45 = vpack.i.bf16 %v3887_v53, %v1956_v49  ;;  %v2863_v11 = vpack.i.bf16 %v3887_v53, %v1827_v50  ;;  %v3157_v56 = vcombine.low %v1304_v54, %v1304_v54  ;;  %v2978_v27 = vpack.i.bf16 %v3887_v53, %v3158_v40 }
 0x253   : > { %v3895_v55 = vcombine.low %v1304_v54, %v3889_v6  ;;  %v3008_v10 = vpack.i.bf16 %v3158_v40, %v3154_v32  ;;  %v2083_v33 = vsel %vm304_vm0, %v3986_v20, 0.0 }
 0x254   : > { %2869 = vrot.lane.b32.xlu0 %v2868_v45, %s3260_s7  ;;  %2864 = vrot.lane.b32.xlu1 %v2863_v11, %s3260_s7 }
 0x255   : > { %1317 = vst [vmem:[#allocation3 + $0xc] sm:$0xff] %v3895_v55  ;;  %v2953_v46 = vpack.i.bf16 %v3895_v55, %v3157_v56 }
 0x259   : > { %v3906_v62 = vld [vmem:[#allocation3] sm:$0xff] }
 0x25a   : > { %v1328_v5 = vcombine.low %v3906_v62, %v3906_v62 }
 0x25c   : > { %v3900_v21 = vld [vmem:[#allocation3 + $0x8] sm:$0xff]  ;;  %v3902_v59 = vld [vmem:[#allocation3 + $0x10] sm:$0xf]  ;;  %v2893_v22 = vpack.i.bf16 %v1328_v5, %v1328_v5  ;;  %v2923_v13 = vpack.i.bf16 %v3906_v62, %v1328_v5  ;;  %v2918_v16 = vpack.i.bf16 %v3887_v53, %v1328_v5 }
 0x25d   : > { %v1394_v61 = vcombine.low %v3900_v21, %v3900_v21  ;;  %v1330_v31 = vcombine.low %v3902_v59, %v3902_v59  ;;  %v3911_v3 = vld [vmem:[#allocation3 + $0x10] sm:$0xf]  ;;  %v4065_v35 = vcombine.high %v3900_v21, %v3900_v21 }
 0x25e   : > { %v3913_v4 = vld [vmem:[#allocation3 + $0x10] sm:$0xf]  ;;  %v1395_v43 = vcombine.low %v3911_v3, %v3911_v3 }
 0x25f   : > { %v2883_v63 = vpack.i.bf16 %v1394_v61, %v3906_v62  ;;  %v2878_v7 = vpack.i.bf16 %v1330_v31, %v3900_v21  ;;  %v1460_v8 = vcombine.low %v3913_v4, %v3913_v4  ;;  %v3924_v52 = vld [vmem:[#allocation3 + $0x10] sm:$0xf]  ;;  %v2928_v19 = vpack.i.bf16 %v3900_v21, %v1394_v61 }
 0x260   : > { %v2888_v9 = vpack.i.bf16 %v1395_v43, %v3900_v21  ;;  %v1525_v1 = vcombine.low %v3924_v52, %v3924_v52  ;;  %v3935_v60 = vld [vmem:[#allocation3 + $0x10] sm:$0xf] }
 0x261   : > { %2884 = vrot.lane.b32.xlu0 %v2883_v63, %s3260_s7  ;;  %2874 = vrot.lane.b32.xlu1 %v2883_v63, %s3260_s7  ;;  %v2903_v12 = vpack.i.bf16 %v1460_v8, %v3900_v21  ;;  %v1590_v14 = vcombine.low %v3935_v60, %v3935_v60  ;;  %v3942_v2 = vld [vmem:[#allocation3 + $0x10] sm:$0xf]  ;;  %v4036_v8 = vcombine.low %v3889_v6, %v3889_v6 }
 0x262   : > { %v2913_v42 = vpack.i.bf16 %v1525_v1, %v3900_v21  ;;  %v1655_v58 = vcombine.low %v3942_v2, %v3942_v2 }
 0x263   : > { %v2933_v17 = vpack.i.bf16 %v3906_v62, %v1590_v14 }
 0x264   : > { %v2943_v0 = vpack.i.bf16 %v1328_v5, %v1655_v58 }
 0x265   : > { %2879 = vrot.lane.b32.xlu1 %v2878_v7, %s3260_s7  ;;  %2894 = vrot.lane.b32.xlu0 %v2893_v22, %s3260_s7 }
 0x269   : > { %2889 = vrot.lane.b32.xlu1 %v2888_v9, %s3260_s7  ;;  %2904 = vrot.lane.b32.xlu0 %v2903_v12, %s3261_s15 }
 0x26d   : > { %2899 = vrot.lane.b32.xlu1 %v2883_v63, %s3261_s15  ;;  %2914 = vrot.lane.b32.xlu0 %v2913_v42, %s3260_s7 }
 0x271   : > { %2909 = vrot.lane.b32.xlu1 %v2883_v63, %s3260_s7  ;;  %2924 = vrot.lane.b32.xlu0 %v2923_v13, %s3260_s7 }
 0x275   : > { %2919 = vrot.lane.b32.xlu1 %v2918_v16, %s3261_s15  ;;  %2934 = vrot.lane.b32.xlu0 %v2933_v17, %s3260_s7 }
 0x279   : > { %2929 = vrot.lane.b32.xlu1 %v2928_v19, %s3260_s7  ;;  %2944 = vrot.lane.b32.xlu0 %v2943_v0, %s3260_s7 }
 0x27d   : > { %2939 = vrot.lane.b32.xlu1 %v2928_v19, %s3260_s7  ;;  %2954 = vrot.lane.b32.xlu0 %v2953_v46, %s3261_s15 }
 0x281   : > { %2949 = vrot.lane.b32.xlu1 %v2918_v16, %s3260_s7  ;;  %2964 = vrot.lane.b32.xlu0 %v2953_v46, %s3260_s7 }
 0x285   : > { %2959 = vrot.lane.b32.xlu1 %v2958_v23, %s3261_s15  ;;  %2969 = vrot.lane.b32.xlu0 %v2953_v46, %s3260_s7  ;;  %s3277_s15 = smov 42  }
 0x289   : > { %2974 = vrot.lane.b32.xlu1 %v2973_v37, %s3260_s7  ;;  %2979 = vrot.lane.b32.xlu0 %v2978_v27, %s3260_s7 }
 0x28d   : > { %2984 = vrot.lane.b32.xlu1 %v2953_v46, %s3260_s7  ;;  %2994 = vrot.lane.b32.xlu0 %v2993_v30, %s3260_s7 }
 0x291   : > { %2989 = vrot.lane.b32.xlu1 %v2953_v46, %s3260_s7  ;;  %3004 = vrot.lane.b32.xlu0 %v2953_v46, %s3260_s7 }
 0x295   : > { %2999 = vrot.lane.b32.xlu1 %v2978_v27, %s3260_s7 }
 0x299   : > { %3009 = vrot.lane.b32.xlu1 %v3008_v10, %s3260_s7  ;;  %s3276_s7 = smov 109  }
 0x29d   : > { %2094 = vrot.lane.b32.xlu1 %v2083_v33, %s3268_s12 }
 0x2c6   : > { %v3992_v36 = vpop.permute.xlu0 %2869  ;;  %v3994_v38 = vpop.permute.xlu1 %2864 }
 0x2c7   : > { %v2866_v22 = vunpack.i.l.bf16 %v3994_v38 }
 0x2c9   : > { %v1851_v16 = vsel %vm304_vm0, %v3875_v34, %v2866_v22 }
 0x2d3   : > { %v3996_v39 = vpop.permute.xlu0 %2884  ;;  %v3998_v41 = vpop.permute.xlu1 %2874 }
 0x2d7   : > { %v4000_v44 = vpop.permute.xlu1 %2879  ;;  %v4002_v18 = vpop.permute.xlu0 %2894 }
 0x2d8   : > { %v2882_v9 = vunpack.i.h.bf16 %v4000_v44  ;;  %v2881_v12 = vunpack.i.l.bf16 %v4000_v44 }
 0x2da   : > { %v1344_v58 = vsel %vm295_vm1, %v2881_v12, %v2882_v9 }
 0x2db   : > { %v4004_v47 = vpop.permute.xlu1 %2889  ;;  %v4006_v28 = vpop.permute.xlu0 %2904  ;;  %v1353_v30 = vsel %vm304_vm0, %v4065_v35, %v1344_v58  ;;  %v2897_v58 = vunpack.i.h.bf16 %v4002_v18 }
 0x2dc   : > { %v2892_v0 = vunpack.i.h.bf16 %v4004_v47  ;;  %v2891_v56 = vunpack.i.l.bf16 %v4004_v47 }
 0x2de   : > { %v1409_v32 = vsel %vm295_vm1, %v2891_v56, %v2892_v0 }
 0x2df   : > { %v4008_v48 = vpop.permute.xlu1 %2899  ;;  %v4010_v49 = vpop.permute.xlu0 %2914 }
 0x2e3   : > { %v4012_v50 = vpop.permute.xlu1 %2909  ;;  %v4014_v51 = vpop.permute.xlu0 %2924 }
 0x2e4   : > { %v2911_v47 = vunpack.i.l.bf16 %v4012_v50 }
 0x2e7   : > { %v4016_v54 = vpop.permute.xlu1 %2919  ;;  %v4018_v45 = vpop.permute.xlu0 %2934 }
 0x2eb   : > { %v4020_v11 = vpop.permute.xlu1 %2929  ;;  %v4022_v61 = vpop.permute.xlu0 %2944 }
 0x2ef   : > { %v4024_v63 = vpop.permute.xlu1 %2939  ;;  %v4026_v31 = vpop.permute.xlu0 %2954 }
 0x2f0   : > { %v4514_v6 = vunpack.i.h.bf16 %v4026_v31 }
 0x2f3   : > { %v4028_v5 = vpop.permute.xlu1 %2949  ;;  %v4030_v7 = vpop.permute.xlu0 %2964 }
 0x2f4   : > { %v2967_v43 = vunpack.i.h.bf16 %v4030_v7 }
 0x2f6   : > { %v1841_v1 = vsel %vm295_vm1, %v2967_v43, %v2866_v22 }
 0x2f7   : > { %v4043_v42 = vpop.permute.xlu1 %2959  ;;  %v4045_v13 = vpop.permute.xlu0 %2969  ;;  %v1850_v14 = vsel %vm304_vm0, %v4036_v8, %v1841_v1 }
 0x2f8   : > { %v2961_v17 = vunpack.i.l.bf16 %v4043_v42  ;;  %v3018_v19 = vpack.i.bf16 %v1851_v16, %v1850_v14  ;;  %v2972_v27 = vunpack.i.h.bf16 %v4045_v13 }
 0x2fa   : > { %v1777_v46 = vsel %vm401_vm2, %v4514_v6, %v2961_v17  ;;  %v1787_v34 = vsel %vm304_vm0, %v3956_v57, %v2961_v17  ;;  %3019 = vrot.lane.b32.xlu0 %v3018_v19, %s3276_s7  ;;  %v1354_v57 = vsel %vm304_vm0, %v3902_v59, %v2882_v9  ;;  %v2871_v9 = vunpack.i.l.bf16 %v3992_v36 }
 0x2fb   : > { %v1786_v40 = vsel %vm304_vm0, %v4036_v8, %v1777_v46  ;;  %v4070_v23 = vpop.permute.xlu1 %2974  ;;  %v4072_v15 = vpop.permute.xlu0 %2979  ;;  %v3043_v1 = vpack.i.bf16 %v1354_v57, %v1353_v30  ;;  %v1418_v19 = vsel %vm304_vm0, %v4065_v35, %v1409_v32  ;;  %v2907_v46 = vunpack.i.h.bf16 %v4006_v28 }
 0x2fc   : > { %v3013_v37 = vpack.i.bf16 %v1787_v34, %v1786_v40  ;;  %v2976_v29 = vunpack.i.l.bf16 %v4070_v23  ;;  %v2906_v34 = vunpack.i.l.bf16 %v4006_v28  ;;  %v1980_v57 = vsel %vm304_vm0, %v3873_v26, %v2871_v9 }
 0x2fd   : > { %v2917_v6 = vunpack.i.h.bf16 %v4010_v49 }
 0x2fe   : > { %v1906_v10 = vsel %vm295_vm1, %v2972_v27, %v2976_v29  ;;  %v1916_v33 = vsel %vm304_vm0, %v3962_v25, %v2976_v29  ;;  %3014 = vrot.lane.b32.xlu1 %v3013_v37, %s3263_s18  ;;  %v1419_v25 = vsel %vm304_vm0, %v3911_v3, %v2892_v0  ;;  %v2886_v37 = vunpack.i.l.bf16 %v3996_v39 }
 0x2ff   : > { %v1915_v22 = vsel %vm304_vm0, %v4036_v8, %v1906_v10  ;;  %v4091_v59 = vpop.permute.xlu1 %2984  ;;  %v4095_v17 = vpop.permute.xlu0 %2994  ;;  %v3053_v30 = vpack.i.bf16 %v1419_v25, %v1418_v19  ;;  %v2877_v10 = vunpack.i.h.bf16 %v3998_v41 }
 0x300   : > { %v3023_v14 = vpack.i.bf16 %v1916_v33, %v1915_v22  ;;  %v2987_v16 = vunpack.i.h.bf16 %v4091_v59  ;;  %v2996_v3 = vunpack.i.l.bf16 %v4095_v17  ;;  %v2876_v33 = vunpack.i.l.bf16 %v3998_v41 }
 0x301   : > { %v1343_v41 = vsel %vm295_vm1, %v2877_v10, %v2881_v12  ;;  %v4148_v12 = vcombine.high %v3906_v62, %v3906_v62 }
 0x302   : > { %v1970_v40 = vsel %vm295_vm1, %v2987_v16, %v2871_v9  ;;  %3024 = vrot.lane.b32.xlu0 %v3023_v14, %s3265_s11  ;;  %3044 = vrot.lane.b32.xlu1 %v3043_v1, %s3277_s15  ;;  %v1406_v1 = vsel %vm295_vm1, %v2897_v58, %v2886_v37  ;;  %v1474_v14 = vsel %vm401_vm2, %v2906_v34, %v2907_v46  ;;  %v2887_v58 = vunpack.i.h.bf16 %v3996_v39 }
 0x303   : > { %v4111_v0 = vpop.permute.xlu1 %2989  ;;  %v1979_v29 = vsel %vm304_vm0, %v4036_v8, %v1970_v40  ;;  %v2916_v40 = vunpack.i.l.bf16 %v4010_v49  ;;  %v2045_v9 = vsel %vm304_vm0, %v3970_v24, %v2996_v3  ;;  %v1342_v19 = vsel %vm295_vm1, %v2876_v33, %v2877_v10 }
 0x304   : > { %v2992_v32 = vunpack.i.h.bf16 %v4111_v0  ;;  %v3028_v22 = vpack.i.bf16 %v1980_v57, %v1979_v29  ;;  %v1484_v29 = vsel %vm304_vm0, %v3913_v4, %v2907_v46  ;;  %v1483_v44 = vsel %vm304_vm0, %v4065_v35, %v1474_v14 }
 0x305   : > { %v1415_v24 = vsel %vm304_vm0, %v3906_v62, %v1406_v1  ;;  %v1352_v39 = vsel %vm304_vm0, %v3900_v21, %v1343_v41  ;;  %v1408_v4 = vsel %vm295_vm1, %v2887_v58, %v2891_v56  ;;  %v1407_v46 = vsel %vm295_vm1, %v2886_v37, %v2887_v58 }
 0x306   : > { %v2035_v26 = vsel %vm295_vm1, %v2992_v32, %v2996_v3  ;;  %3054 = vrot.lane.b32.xlu1 %v3053_v30, %s3278_s28  ;;  %3029 = vrot.lane.b32.xlu0 %v3028_v22, %s3279_s19  ;;  %v1539_v3 = vsel %vm295_vm1, %v2916_v40, %v2917_v6  ;;  %v3063_v57 = vpack.i.bf16 %v1484_v29, %v1483_v44  ;;  %v2896_v10 = vunpack.i.l.bf16 %v4002_v18 }
 0x307   : > { %v2044_v49 = vsel %vm304_vm0, %v4036_v8, %v2035_v26  ;;  %v1351_v30 = vsel %vm304_vm0, %v4148_v12, %v1342_v19  ;;  %v1549_v22 = vsel %vm304_vm0, %v3924_v52, %v2917_v6  ;;  %v1548_v1 = vsel %vm304_vm0, %v4065_v35, %v1539_v3 }
 0x308   : > { %v3033_v25 = vpack.i.bf16 %v2045_v9, %v2044_v49  ;;  %v3038_v14 = vpack.i.bf16 %v1352_v39, %v1351_v30  ;;  %v2926_v56 = vunpack.i.l.bf16 %v4014_v51  ;;  %v2932_v26 = vunpack.i.h.bf16 %v4020_v11 }
 0x309   : > { %v1417_v37 = vsel %vm304_vm0, %v3900_v21, %v1408_v4  ;;  %v2902_v18 = vunpack.i.h.bf16 %v4008_v48  ;;  %v2901_v52 = vunpack.i.l.bf16 %v4008_v48  ;;  %v3073_v6 = vpack.i.bf16 %v1549_v22, %v1548_v1 }
 0x30a   : > { %1425 = vrot.lane.b32.xlu1 %v1415_v24, %s3278_s28  ;;  %3034 = vrot.lane.b32.xlu0 %v3033_v25, %s3267_s10  ;;  %v2936_v41 = vunpack.i.l.bf16 %v4018_v45  ;;  %v1416_v9 = vsel %vm304_vm0, %v4148_v12, %v1407_v46  ;;  %v1341_v58 = vsel %vm295_vm1, %v2896_v10, %v2876_v33  ;;  %v2912_v25 = vunpack.i.h.bf16 %v4012_v50 }
 0x30b   : > { %v3048_v49 = vpack.i.bf16 %v1417_v37, %v1416_v9  ;;  %v2942_v29 = vunpack.i.h.bf16 %v4024_v63  ;;  %v1536_v48 = vsel %vm295_vm1, %v2926_v56, %v2911_v47  ;;  %v1472_v44 = vsel %vm401_vm2, %v2901_v52, %v2902_v18 }
 0x30c   : > { %v1604_v19 = vsel %vm295_vm1, %v2932_v26, %v2936_v41  ;;  %v1473_v24 = vsel %vm401_vm2, %v2902_v18, %v2906_v34  ;;  %v2946_v33 = vunpack.i.l.bf16 %v4022_v61  ;;  %v1545_v50 = vsel %vm304_vm0, %v3906_v62, %v1536_v48 }
 0x30d   : > { %v1350_v3 = vsel %vm304_vm0, %v3906_v62, %v1341_v58  ;;  %v1613_v39 = vsel %vm304_vm0, %v4065_v35, %v1604_v19  ;;  %v1537_v4 = vsel %vm295_vm1, %v2911_v47, %v2912_v25  ;;  %v1481_v28 = vsel %vm304_vm0, %v4148_v12, %v1472_v44 }
 0x30e   : > { %3064 = vrot.lane.b32.xlu1 %v3063_v57, %s3280_s13  ;;  %3039 = vrot.lane.b32.xlu0 %v3038_v14, %s3277_s15  ;;  %v1669_v46 = vsel %vm295_vm1, %v2942_v29, %v2946_v33  ;;  %v1482_v34 = vsel %vm304_vm0, %v3900_v21, %v1473_v24  ;;  %v1538_v57 = vsel %vm295_vm1, %v2912_v25, %v2916_v40  ;;  %v2921_v22 = vunpack.i.l.bf16 %v4016_v54 }
 0x30f   : > { %v1614_v30 = vsel %vm304_vm0, %v3935_v60, %v2936_v41  ;;  %v3058_v1 = vpack.i.bf16 %v1482_v34, %v1481_v28  ;;  %v1678_v14 = vsel %vm304_vm0, %v4065_v35, %v1669_v46  ;;  %v1546_v47 = vsel %vm304_vm0, %v4148_v12, %v1537_v4 }
 0x310   : > { %v3083_v10 = vpack.i.bf16 %v1614_v30, %v1613_v39  ;;  %v2952_v56 = vunpack.i.h.bf16 %v4028_v5  ;;  %v2951_v37 = vunpack.i.l.bf16 %v4028_v5  ;;  %v2966_v40 = vunpack.i.l.bf16 %v4030_v7 }
 0x311   : > { %v1547_v60 = vsel %vm304_vm0, %v3900_v21, %v1538_v57  ;;  %v2931_v18 = vunpack.i.l.bf16 %v4020_v11  ;;  %v1679_v35 = vsel %vm304_vm0, %v3942_v2, %v2946_v33  ;;  %v2927_v5 = vunpack.i.h.bf16 %v4014_v51 }
 0x312   : > { %3074 = vrot.lane.b32.xlu1 %v3073_v6, %s3281_s14  ;;  %3049 = vrot.lane.b32.xlu0 %v3048_v49, %s3278_s28  ;;  %v2937_v6 = vunpack.i.h.bf16 %v4018_v45  ;;  %v3093_v41 = vpack.i.bf16 %v1679_v35, %v1678_v14  ;;  %v3068_v9 = vpack.i.bf16 %v1547_v60, %v1546_v47  ;;  %v1471_v49 = vsel %vm401_vm2, %v2921_v22, %v2901_v52 }
 0x313   : > { %v1839_v58 = vsel %vm295_vm1, %v2952_v56, %v2966_v40  ;;  %v1840_v25 = vsel %vm295_vm1, %v2966_v40, %v2967_v43  ;;  %v2971_v11 = vunpack.i.l.bf16 %v4045_v13  ;;  %v1602_v45 = vsel %vm295_vm1, %v2927_v5, %v2931_v18 }
 0x314   : > { %v1666_v2 = vsel %vm295_vm1, %v2951_v37, %v2937_v6  ;;  %v1603_v51 = vsel %vm295_vm1, %v2931_v18, %v2932_v26  ;;  %v2941_v19 = vunpack.i.l.bf16 %v4024_v63  ;;  %v2867_v52 = vunpack.i.h.bf16 %v3994_v38 }
 0x315   : > { %v1675_v7 = vsel %vm304_vm0, %v3906_v62, %v1666_v2  ;;  %v1480_v43 = vsel %vm304_vm0, %v3906_v62, %v1471_v49  ;;  %v1848_v48 = vsel %vm304_vm0, %v3986_v20, %v1839_v58  ;;  %v1849_v44 = vsel %vm304_vm0, %v3895_v55, %v1840_v25  ;;  %v4317_v58 = vpop.permute.xlu1 %2999 }
 0x316   : > { %1555 = vrot.lane.b32.xlu1 %v1545_v50, %s3281_s14  ;;  %1360 = vrot.lane.b32.xlu0 %v1350_v3, %s3277_s15  ;;  %v1904_v63 = vsel %vm295_vm1, %v2867_v52, %v2971_v11  ;;  %v1905_v26 = vsel %vm295_vm1, %v2971_v11, %v2972_v27  ;;  %v1611_v24 = vsel %vm304_vm0, %v4148_v12, %v1602_v45  ;;  %v2947_v4 = vunpack.i.h.bf16 %v4022_v61 }
 0x317   : > { %v1612_v33 = vsel %vm304_vm0, %v3900_v21, %v1603_v51  ;;  %v1667_v50 = vsel %vm295_vm1, %v2937_v6, %v2941_v19  ;;  %v1668_v3 = vsel %vm295_vm1, %v2941_v19, %v2942_v29  ;;  %v3103_v39 = vpack.i.bf16 %v1849_v44, %v1848_v48  ;;  %v2167_v48 = vld [vmem:[%s4510_s4] sm:$0xf] }
 0x318   : > { %v3078_v13 = vpack.i.bf16 %v1612_v33, %v1611_v24  ;;  %v1913_v27 = vsel %vm304_vm0, %v3986_v20, %v1904_v63  ;;  %v1914_v46 = vsel %vm304_vm0, %v3895_v55, %v1905_v26  ;;  %v2977_v28 = vunpack.i.h.bf16 %v4070_v23 }
 0x319   : > { %v2986_v34 = vunpack.i.l.bf16 %v4091_v59  ;;  %v1676_v29 = vsel %vm304_vm0, %v4148_v12, %v1667_v50  ;;  %v1677_v57 = vsel %vm304_vm0, %v3900_v21, %v1668_v3  ;;  %v2956_v61 = vunpack.i.l.bf16 %v4026_v31  ;;  %v4352_v44 = vpop.permute.xlu1 %3009 }
 0x31a   : > { %3084 = vrot.lane.b32.xlu1 %v3083_v10, %s3282_s29  ;;  %3059 = vrot.lane.b32.xlu0 %v3058_v1, %s3280_s13  ;;  %v2982_v30 = vunpack.i.h.bf16 %v4072_v15  ;;  %v3108_v10 = vpack.i.bf16 %v1914_v46, %v1913_v27  ;;  %v2922_v22 = vunpack.i.h.bf16 %v4016_v54  ;;  %v3088_v23 = vpack.i.bf16 %v1677_v57, %v1676_v29 }
 0x31b   : > { %v1601_v1 = vsel %vm295_vm1, %v2947_v4, %v2927_v5  ;;  %v1969_v12 = vsel %vm295_vm1, %v2986_v34, %v2987_v16  ;;  %v2991_v21 = vunpack.i.l.bf16 %v4111_v0  ;;  %v1838_v47 = vsel %vm295_vm1, %v2977_v28, %v2952_v56 }
 0x31c   : > { %v1968_v14 = vsel %vm295_vm1, %v2982_v30, %v2986_v34  ;;  %v1775_v37 = vsel %vm401_vm2, %v2922_v22, %v2956_v61  ;;  %v4521_v40 = vunpack.i.h.bf16 %v4026_v31  ;;  %v2872_v60 = vunpack.i.h.bf16 %v3992_v36 }
 0x31d   : > { %v1847_v59 = vsel %vm304_vm0, %v3887_v53, %v1838_v47  ;;  %v1610_v16 = vsel %vm304_vm0, %v3906_v62, %v1601_v1  ;;  %v1977_v18 = vsel %vm304_vm0, %v3986_v20, %v1968_v14  ;;  %v1978_v56 = vsel %vm304_vm0, %v3895_v55, %v1969_v12  ;;  %v4356_v63 = vpop.permute.xlu1 %2094 }
 0x31e   : > { %3094 = vrot.lane.b32.xlu1 %v3093_v41, %s3283_s16  ;;  %3069 = vrot.lane.b32.xlu0 %v3068_v9, %s3281_s14  ;;  %v1776_v54 = vsel %vm401_vm2, %v2956_v61, %v4521_v40  ;;  %v2033_v31 = vsel %vm295_vm1, %v2872_v60, %v2991_v21  ;;  %v2034_v35 = vsel %vm295_vm1, %v2991_v21, %v2992_v32  ;;  %v2962_v6 = vunpack.i.h.bf16 %v4043_v42  ;;  %s2333_s14 = scalar_lea.sflag [#allocation6], %s3419_s20 }
 0x31f   : > { %v1784_v36 = vsel %vm304_vm0, %v3986_v20, %v1775_v37  ;;  %v1785_v62 = vsel %vm304_vm0, %v3895_v55, %v1776_v54  ;;  %v3113_v41 = vpack.i.bf16 %v1978_v56, %v1977_v18  ;;  %v2042_v9 = vsel %vm304_vm0, %v3986_v20, %v2033_v31 }
 0x320   : > { %v3098_v5 = vpack.i.bf16 %v1785_v62, %v1784_v36  ;;  %v2043_v0 = vsel %vm304_vm0, %v3895_v55, %v2034_v35  ;;  %v2997_v32 = vunpack.i.h.bf16 %v4095_v17  ;;  %v2981_v49 = vunpack.i.l.bf16 %v4072_v15 }
 0x321   : > { %v1774_v42 = vsel %vm401_vm2, %v2962_v6, %v2922_v22  ;;  %v3118_v25 = vpack.i.bf16 %v2043_v0, %v2042_v9  ;;  %v3001_v17 = vunpack.i.l.bf16 %v4317_v58  ;;  %v2085_v19 = vsel %vm304_vm0, %v4036_v8, 0.0 }
 0x322   : > { %1685 = vrot.lane.b32.xlu1 %v1675_v7, %s3283_s16  ;;  %1490 = vrot.lane.b32.xlu0 %v1480_v43, %s3280_s13  ;;  %v1783_v20 = vsel %vm304_vm0, %v3887_v53, %v1774_v42  ;;  %v1967_v11 = vsel %vm295_vm1, %v2997_v32, %v2982_v30  ;;  %v1903_v15 = vsel %vm295_vm1, %v2981_v49, %v2867_v52  ;;  %v2082_v52 = vsel %vm304_vm0, %v3887_v53, 0.0  ;;  %v2075_v7 = vld [vmem:[#allocation3 + $0x14] sm:$0xf]  ;;  %s4462_s13 = scalar_lea.hbm %s4512_s6, %s2432_s26 }
 0x323   : > { %v1976_v2 = vsel %vm304_vm0, %v3887_v53, %v1967_v11  ;;  %v1912_v45 = vsel %vm304_vm0, %v3887_v53, %v1903_v15  ;;  %v2032_v51 = vsel %vm295_vm1, %v3001_v17, %v2872_v60  ;;  %v2084_v43 = vsel %vm304_vm0, %v3895_v55, 0.0 }
 0x324   : > { %v2041_v38 = vsel %vm304_vm0, %v3887_v53, %v2032_v51  ;;  %v2086_v8 = vsel %vm304_vm0, %v2075_v7, 0.0  ;;  %v4354_v53 = vpop.permute.xlu0 %3004  ;;  %vm1370_vm2 = vcmask 343040  }
 0x326   : > { %3104 = vrot.lane.b32.xlu1 %v3103_v39, %s3276_s7  ;;  %3079 = vrot.lane.b32.xlu0 %v3078_v13, %s3282_s29 }
 0x32a   : > { %3109 = vrot.lane.b32.xlu1 %v3108_v10, %s3265_s11  ;;  %3089 = vrot.lane.b32.xlu0 %v3088_v23, %s3283_s16  ;;  %s3195_s16 = sshll.u32 %s3284_s25, 4  ;;  %s3196_s16 = int_to_ptr.vmem [resolvable:$false] %s3195_s16 }
 0x32e   : > { %1857 = vrot.lane.b32.xlu1 %v1847_v59, %s3276_s7  ;;  %1620 = vrot.lane.b32.xlu0 %v1610_v16, %s3282_s29  ;;  %s267_s7 = scalar_lea.vmem [#allocation7], %s2422_s17 }
 0x32f   : > { %s2347_s15 = sshll.u32 %s267_s7, 4  ;;  %s4464_s15 = int_to_ptr.vmem [resolvable:$true] %s2347_s15 }
 0x330   : > { %s3191_s29 = scalar_lea.vmem %s4464_s15, 256  ;;  %p3198_p5 = scmp.lt.s32.totalorder %s4464_s15, %s3196_s16 }
 0x331   : > { %p3192_p6 = scmp.ne.s32.totalorder %s4464_s15, %s3191_s29 }
 0x332   : > { %3114 = vrot.lane.b32.xlu1 %v3113_v41, %s3279_s19  ;;  %3099 = vrot.lane.b32.xlu0 %v3098_v5, %s3263_s18 }
 0x333   : > { %p3193_p12 = pnand %p3192_p6, %p4522_p11 }
 0x335   : > { %p3194_p13 = pneg %p3193_p12 }
 0x336   : > { %3119 = vrot.lane.b32.xlu1 %v3118_v25, %s3267_s10  ;;  %1793 = vrot.lane.b32.xlu0 %v1783_v20, %s3263_s18  ;;  %s3197_s18 = scalar_lea.vmem %s3196_s16, 512 }
 0x337   : > { %p3199_p10 = scmp.lt.s32.totalorder %s3197_s18, %s3191_s29 }
 0x339   : > { %p3200_p2 = por %p3199_p10, %p3198_p5 }
 0x33a   : > { %1986 = vrot.lane.b32.xlu1 %v1976_v2, %s3279_s19  ;;  %1922 = vrot.lane.b32.xlu0 %v1912_v45, %s3265_s11 }
 0x33b   : > { %p3201_p4 = pnand %p3200_p2, %p3194_p13 }
 0x33e   : > { %2098 = vrot.lane.b32.xlu1 %v2085_v19, %s3268_s12  ;;  %2051 = vrot.lane.b32.xlu0 %v2041_v38, %s3267_s10 }
 0x342   : > { %2092 = vrot.lane.b32.xlu1 %v2082_v52, %s3268_s12  ;;  %2096 = vrot.lane.b32.xlu0 %v2084_v43, %s3268_s12 }
 0x346   : > { %2100 = vrot.lane.b32.xlu0 %v2086_v8, %s3268_s12 }
 0x34a   : > { %2170 = vperm.xlu0 %2862, %v2167_v48  }
 0x36c   : > { %v4358_v26 = vpop.permute.xlu0 %3019 }
 0x370   : > { %v4360_v55 = vpop.permute.xlu1 %3014 }
 0x374   : > { %v4362_v24 = vpop.permute.xlu0 %3024  ;;  %v3045_v33 = vpop.permute.xlu1 %3044 }
 0x375   : > { %v3047_v50 = vunpack.i.h.bf16 %v3045_v33  ;;  %v3046_v3 = vunpack.i.l.bf16 %v3045_v33 }
 0x377   : > { %v1374_v46 = vsel %vm1370_vm2, %v3046_v3, %v3047_v50 }
 0x378   : > { %v3055_v39 = vpop.permute.xlu1 %3054  ;;  %v4364_v4 = vpop.permute.xlu0 %3029 }
 0x379   : > { %v3057_v13 = vunpack.i.h.bf16 %v3055_v39  ;;  %v3056_v27 = vunpack.i.l.bf16 %v3055_v39 }
 0x37b   : > { %v1439_v28 = vsel %vm1435_vm4, %v3056_v27, %v3057_v13 }
 0x37c   : > { %v1426_v34 = vpop.permute.xlu1 %1425  ;;  %v2505_v29 = vpack.c.bf16 %v1439_v28, %v1374_v46  ;;  %v4368_v57 = vpop.permute.xlu0 %3034  ;;  %v3011_v28 = vunpack.i.l.bf16 %v4352_v44 }
 0x37e   : > { %2506 = vmatprep.subr.bf16.mxu1 %v2505_v29 }
 0x380   : > { %v3065_v61 = vpop.permute.xlu1 %3064  ;;  %v3040_v30 = vpop.permute.xlu0 %3039 }
 0x381   : > { %v3067_v10 = vunpack.i.h.bf16 %v3065_v61  ;;  %v3066_v22 = vunpack.i.l.bf16 %v3065_v61  ;;  %v3042_v23 = vunpack.i.h.bf16 %v3040_v30  ;;  %v3041_v1 = vunpack.i.l.bf16 %v3040_v30  ;;  %v1709_v30 = vld [vmem:[#allocation3 + $0xc] sm:$0xff] }
 0x382   : > { %v3007_v61 = vunpack.i.h.bf16 %v4354_v53 }
 0x383   : > { %v1373_v54 = vsel %vm1370_vm2, %v3042_v23, %v3046_v3  ;;  %v1504_v60 = vsel %vm1500_vm6, %v3066_v22, %v3067_v10  ;;  %v1372_v56 = vsel %vm1370_vm2, %v3041_v1, %v3042_v23  ;;  %v3006_v10 = vunpack.i.l.bf16 %v4354_v53 }
 0x384   : > { %v3075_v14 = vpop.permute.xlu1 %3074  ;;  %v3050_v47 = vpop.permute.xlu0 %3049  ;;  %v3017_v23 = vunpack.i.h.bf16 %v4360_v55 }
 0x385   : > { %v3077_v12 = vunpack.i.h.bf16 %v3075_v14  ;;  %v3076_v21 = vunpack.i.l.bf16 %v3075_v14  ;;  %v3052_v37 = vunpack.i.h.bf16 %v3050_v47  ;;  %v3051_v40 = vunpack.i.l.bf16 %v3050_v47 }
 0x386   : > { %v1738_v14 = vsel %vm295_vm1, %v3007_v61, %v3011_v28  ;;  %v1737_v53 = vsel %vm295_vm1, %v3006_v10, %v3007_v61 }
 0x387   : > { %v1569_v59 = vsel %vm1565_vm9, %v3076_v21, %v3077_v12  ;;  %v1438_v16 = vsel %vm1435_vm4, %v3052_v37, %v3056_v27  ;;  %v1437_v31 = vsel %vm1435_vm4, %v3051_v40, %v3052_v37  ;;  %v1436_v5 = vsel %vm1435_vm4, %v1426_v34, %v3051_v40 }
 0x388   : > { %v1556_v18 = vpop.permute.xlu1 %1555  ;;  %v2509_v35 = vpack.c.bf16 %v1569_v59, %v1504_v60  ;;  %v2507_v36 = vpack.c.bf16 %v1438_v16, %v1373_v54  ;;  %v1361_v62 = vpop.permute.xlu0 %1360  ;;  %v2481_v6 = vpack.c.bf16 %v1437_v31, %v1372_v56  ;;  %v1716_v40 = vcombine.high %v1709_v30, %v1709_v30 }
 0x389   : > { %v1371_v41 = vsel %vm1370_vm2, %v1361_v62, %v3041_v1  ;;  %v3016_v1 = vunpack.i.l.bf16 %v4360_v55  ;;  %v3012_v54 = vunpack.i.h.bf16 %v4352_v44  ;;  %v3022_v62 = vunpack.i.h.bf16 %v4358_v26 }
 0x38a   : > { %v2483_v9 = vpack.c.bf16 %v1436_v5, %v1371_v41  ;;  %2482 = vmatprep.subr.bf16.mxu0 %v2481_v6  ;;  %2508 = vmatpush1.bf16.msra.mxu1 %v2507_v36  ;;  %v1746_v16 = vsel %vm304_vm0, %v1716_v40, %v1738_v14  ;;  %v1708_v36 = vld [vmem:[#allocation3 + $0x4] sm:$0xff]  ;;  %v3021_v6 = vunpack.i.l.bf16 %v4358_v26 }
 0x38b   : > { %2510 = vmatprep.subr.bf16.mxu1 %v2509_v35  ;;  %v1806_v55 = vsel %vm365_vm3, %v3016_v1, %v3017_v23 }
 0x38c   : > { %v3085_v0 = vpop.permute.xlu1 %3084  ;;  %v3060_v32 = vpop.permute.xlu0 %3059  ;;  %2484 = vmatpush1.bf16.msra.mxu0 %v2483_v9 }
 0x38d   : > { %v3087_v49 = vunpack.i.h.bf16 %v3085_v0  ;;  %v3086_v42 = vunpack.i.l.bf16 %v3085_v0  ;;  %v3062_v25 = vunpack.i.h.bf16 %v3060_v32  ;;  %v3061_v20 = vunpack.i.l.bf16 %v3060_v32 }
 0x38f   : > { %v1503_v19 = vsel %vm1500_vm6, %v3062_v25, %v3066_v22  ;;  %v1634_v38 = vsel %vm1630_vm10, %v3086_v42, %v3087_v49  ;;  %v1502_v8 = vsel %vm1500_vm6, %v3061_v20, %v3062_v25  ;;  %v3002_v22 = vunpack.i.h.bf16 %v4317_v58 }
 0x390   : > { %v3095_v11 = vpop.permute.xlu1 %3094  ;;  %v3070_v2 = vpop.permute.xlu0 %3069  ;;  %v2517_v49 = vpack.c.bf16 %v1806_v55, %v1746_v16  ;;  %v3027_v25 = vunpack.i.h.bf16 %v4362_v24 }
 0x391   : > { %v3097_v17 = vunpack.i.h.bf16 %v3095_v11  ;;  %v3096_v15 = vunpack.i.l.bf16 %v3095_v11  ;;  %v3072_v45 = vunpack.i.h.bf16 %v3070_v2  ;;  %v3071_v51 = vunpack.i.l.bf16 %v3070_v2 }
 0x392   : > { %v1736_v58 = vsel %vm295_vm1, %v3002_v22, %v3006_v10 }
 0x393   : > { %v1699_v52 = vsel %vm1695_vm11, %v3096_v15, %v3097_v17  ;;  %v1568_v7 = vsel %vm1565_vm9, %v3072_v45, %v3076_v21  ;;  %v1567_v48 = vsel %vm1565_vm9, %v3071_v51, %v3072_v45  ;;  %v1566_v27 = vsel %vm1565_vm9, %v1556_v18, %v3071_v51 }
 0x394   : > { %v1686_v43 = vpop.permute.xlu1 %1685  ;;  %v2513_v33 = vpack.c.bf16 %v1699_v52, %v1634_v38  ;;  %v2511_v50 = vpack.c.bf16 %v1568_v7, %v1503_v19  ;;  %v1491_v3 = vpop.permute.xlu0 %1490  ;;  %v2485_v39 = vpack.c.bf16 %v1567_v48, %v1502_v8  ;;  %v1715_v17 = vcombine.high %v1708_v36, %v1708_v36 }
 0x395   : > { %v1501_v13 = vsel %vm1500_vm6, %v1491_v3, %v3061_v20  ;;  %v3026_v20 = vunpack.i.l.bf16 %v4362_v24  ;;  %v1745_v45 = vsel %vm304_vm0, %v1709_v30, %v1737_v53  ;;  %v1871_v24 = vsel %vm1867_vm12, %v3021_v6, %v3022_v62 }
 0x396   : > { %v2487_v46 = vpack.c.bf16 %v1566_v27, %v1501_v13  ;;  %2486 = vmatprep.subr.bf16.mxu0 %v2485_v39  ;;  %2512 = vmatpush1.bf16.msra.mxu1 %v2511_v50  ;;  %v1744_v38 = vsel %vm304_vm0, %v1715_v17, %v1736_v58  ;;  %v3037_v52 = vunpack.i.h.bf16 %v4368_v57  ;;  %v3036_v7 = vunpack.i.l.bf16 %v4368_v57 }
 0x397   : > { %2514 = vmatprep.subr.bf16.mxu1 %v2513_v33  ;;  %v3032_v48 = vunpack.i.h.bf16 %v4364_v4  ;;  %v1935_v3 = vsel %vm496_vm5, %v3026_v20, %v3027_v25  ;;  %v3031_v39 = vunpack.i.l.bf16 %v4364_v4 }
 0x398   : > { %v4387_v34 = vpop.permute.xlu1 %3104  ;;  %v3080_v29 = vpop.permute.xlu0 %3079  ;;  %2488 = vmatpush1.bf16.msra.mxu0 %v2487_v46  ;;  %v2521_v23 = vpack.c.bf16 %v1935_v3, %v1871_v24  ;;  %v2064_v14 = vsel %vm626_vm7, %v3036_v7, %v3037_v52 }
 0x399   : > { %v3082_v12 = vunpack.i.h.bf16 %v3080_v29  ;;  %v3081_v21 = vunpack.i.l.bf16 %v3080_v29  ;;  %v3107_v33 = vunpack.i.h.bf16 %v4387_v34  ;;  %v3106_v50 = vunpack.i.l.bf16 %v4387_v34 }
 0x39b   : > { %v1633_v18 = vsel %vm1630_vm10, %v3082_v12, %v3086_v42  ;;  %v1632_v35 = vsel %vm1630_vm10, %v3081_v21, %v3082_v12  ;;  %v1735_v42 = vsel %vm295_vm1, %v3012_v54, %v3002_v22  ;;  %v1870_v40 = vsel %vm1867_vm12, %v3107_v33, %v3021_v6 }
 0x39c   : > { %v4395_v47 = vpop.permute.xlu1 %3109  ;;  %v3090_v37 = vpop.permute.xlu0 %3089  ;;  %v1743_v19 = vsel %vm304_vm0, %v1708_v36, %v1735_v42  ;;  %v2114_v42 = vld [vmem:[%s4509_s3] sm:$0xf] }
 0x39d   : > { %v3092_v60 = vunpack.i.h.bf16 %v3090_v37  ;;  %v3091_v59 = vunpack.i.l.bf16 %v3090_v37  ;;  %v3112_v26 = vunpack.i.h.bf16 %v4395_v47 }
 0x39f   : > { %v1698_v56 = vsel %vm1695_vm11, %v3092_v60, %v3096_v15  ;;  %v1697_v44 = vsel %vm1695_vm11, %v3091_v59, %v3092_v60  ;;  %v1696_v32 = vsel %vm1695_vm11, %v1686_v43, %v3091_v59  ;;  %v3111_v15 = vunpack.i.l.bf16 %v4395_v47 }
 0x3a0   : > { %v4404_v31 = vpop.permute.xlu1 %1857  ;;  %v2515_v41 = vpack.c.bf16 %v1698_v56, %v1633_v18  ;;  %v1621_v5 = vpop.permute.xlu0 %1620  ;;  %v2489_v9 = vpack.c.bf16 %v1697_v44, %v1632_v35  ;;  %v1934_v22 = vsel %vm496_vm5, %v3112_v26, %v3026_v20  ;;  %v2000_v59 = vsel %vm1996_vm13, %v3031_v39, %v3032_v48 }
 0x3a1   : > { %v1631_v0 = vsel %vm1630_vm10, %v1621_v5, %v3081_v21  ;;  %v1933_v28 = vsel %vm496_vm5, %v3111_v15, %v3112_v26  ;;  %v1869_v21 = vsel %vm1867_vm12, %v3106_v50, %v3107_v33  ;;  %v2523_v60 = vpack.c.bf16 %v1934_v22, %v1870_v40 }
 0x3a2   : > { %v2491_v11 = vpack.c.bf16 %v1696_v32, %v1631_v0  ;;  %2490 = vmatprep.subr.bf16.mxu0 %v2489_v9  ;;  %2516 = vmatpush1.bf16.msra.mxu1 %v2515_v41  ;;  %v2497_v37 = vpack.c.bf16 %v1933_v28, %v1869_v21  ;;  %v1868_v58 = vsel %vm1867_vm12, %v4404_v31, %v3106_v50 }
 0x3a3   : > { %2518 = vmatprep.subr.bf16.mxu1 %v2517_v49  ;;  %v2525_v18 = vpack.c.bf16 %v2064_v14, %v2000_v59 }
 0x3a4   : > { %v3115_v2 = vpop.permute.xlu1 %3114  ;;  %v3100_v51 = vpop.permute.xlu0 %3099  ;;  %2492 = vmatpush1.bf16.msra.mxu0 %v2491_v11 }
 0x3a5   : > { %v3102_v43 = vunpack.i.h.bf16 %v3100_v51  ;;  %v3101_v8 = vunpack.i.l.bf16 %v3100_v51  ;;  %v3117_v4 = vunpack.i.h.bf16 %v3115_v2  ;;  %v3116_v12 = vunpack.i.l.bf16 %v3115_v2 }
 0x3a7   : > { %v1805_v13 = vsel %vm365_vm3, %v3102_v43, %v3016_v1  ;;  %v1804_v46 = vsel %vm365_vm3, %v3101_v8, %v3102_v43  ;;  %v1998_v35 = vsel %vm1996_vm13, %v3116_v12, %v3117_v4  ;;  %v1999_v62 = vsel %vm1996_vm13, %v3117_v4, %v3031_v39 }
 0x3a8   : > { %v3120_v27 = vpop.permute.xlu1 %3119  ;;  %v2519_v57 = vpack.c.bf16 %v1805_v13, %v1745_v45  ;;  %v1794_v30 = vpop.permute.xlu0 %1793  ;;  %v2493_v10 = vpack.c.bf16 %v1804_v46, %v1744_v38 }
 0x3a9   : > { %v3122_v29 = vunpack.i.h.bf16 %v3120_v27  ;;  %v3121_v61 = vunpack.i.l.bf16 %v3120_v27  ;;  %v1803_v34 = vsel %vm365_vm3, %v1794_v30, %v3101_v8 }
 0x3aa   : > { %v2495_v1 = vpack.c.bf16 %v1803_v34, %v1743_v19  ;;  %2494 = vmatprep.subr.bf16.mxu0 %v2493_v10  ;;  %2520 = vmatpush1.bf16.msra.mxu1 %v2519_v57 }
 0x3ab   : > { %2522 = vmatprep.subr.bf16.mxu1 %v2521_v23  ;;  %v2062_v53 = vsel %vm626_vm7, %v3121_v61, %v3122_v29  ;;  %v2063_v16 = vsel %vm626_vm7, %v3122_v29, %v3036_v7 }
 0x3ac   : > { %v1987_v47 = vpop.permute.xlu1 %1986  ;;  %v1923_v54 = vpop.permute.xlu0 %1922  ;;  %2496 = vmatpush1.bf16.msra.mxu0 %v2495_v1  ;;  %v2501_v36 = vpack.c.bf16 %v2062_v53, %v1998_v35  ;;  %v2527_v41 = vpack.c.bf16 %v2063_v16, %v1999_v62 }
 0x3ad   : > { %v1932_v55 = vsel %vm496_vm5, %v1923_v54, %v3111_v15  ;;  %2498 = vmatprep.subr.bf16.mxu0 %v2497_v37  ;;  %v1997_v31 = vsel %vm1996_vm13, %v1987_v47, %v3116_v12 }
 0x3ae   : > { %v2499_v56 = vpack.c.bf16 %v1932_v55, %v1868_v58  ;;  %2524 = vmatpush1.bf16.msra.mxu1 %v2523_v60 }
 0x3af   : > { %2526 = vmatprep.subr.bf16.mxu1 %v2525_v18 }
 0x3b0   : > { %v2099_v44 = vpop.permute.xlu1 %2098  ;;  %v2052_v6 = vpop.permute.xlu0 %2051  ;;  %2500 = vmatpush1.bf16.msra.mxu0 %v2499_v56 }
 0x3b1   : > { %v2061_v5 = vsel %vm626_vm7, %v2052_v6, %v3121_v61  ;;  %2502 = vmatprep.subr.bf16.mxu0 %v2501_v36 }
 0x3b2   : > { %v2503_v9 = vpack.c.bf16 %v2061_v5, %v1997_v31  ;;  %2528 = vmatpush1.bf16.msra.mxu1 %v2527_v41 }
 0x3b4   : > { %v2093_v0 = vpop.permute.xlu1 %2092  ;;  %v2097_v32 = vpop.permute.xlu0 %2096  ;;  %2504 = vmatpush1.bf16.msra.mxu0 %v2503_v9 }
 0x3b5   : > { %v2103_v49 = vsel %vm691_vm8, %v4356_v63, %v2097_v32  ;;  %v2102_v25 = vsel %vm691_vm8, %v2093_v0, %v4356_v63  ;;  %v2104_v17 = vsel %vm691_vm8, %v2097_v32, %v2099_v44 }
 0x3b6   : > { %2200 = vmatprep.subr.mxu0 %v2103_v49 }
 0x3b8   : > { %v2101_v20 = vpop.permute.xlu0 %2100  ;;  %2201 = vmatpush1.msra.mxu0 %v2102_v25 }
 0x3b9   : > { %2425 = vmatmul.mubr.msk.f32.vlgmr.msra.gmra.mrb[2].mxu0 %vm1130_vm15, %v2114_v42  ;;  %v2105_v11 = vsel %vm691_vm8, %v2099_v44, %v2101_v20 }
 0x3ba   : > { %2271 = vmatprep.subr.mxu1 %v2105_v11 }
 0x3bb   : > { %2272 = vmatpush1.msra.mxu1 %v2104_v17 }
 0x3bc   : > { %2426 = vmatmul.mubr.msk.f32.vlgmr.msra.gmra.mrb[2].mxu1 %vm1130_vm15, %v2114_v42 }
 0x3c9   : > { %v2171_v26 = vpop.permute.xlu0 %2170 }
 0x48c   : > { %v2242_v15 = vpop.f32.mrb[2].mxu0 }
 0x48d   : > { %v2243_v2 = vadd.f32 %v2242_v15, %v2171_v26  ;;  %v2244_v45 = vpop.f32.mrb[3].mxu0 }
 0x48e   : > { %v2245_v51 = vadd.f32 %v2244_v45, %v2171_v26 }
 0x48f   : > { %v2318_v63 = vmax.f32 %v2243_v2, 0.0  ;;  %v2313_v19 = vpop.f32.mrb[2].mxu1 }
 0x490   : > { %v2319_v38 = vmax.f32 %v2245_v51, 0.0  ;;  %v2314_v24 = vadd.f32 %v2313_v19, %v2171_v26  ;;  %v2315_v52 = vpop.f32.mrb[3].mxu1 }
 0x491   : > { %v2316_v7 = vadd.f32 %v2315_v52, %v2171_v26 }
 0x492   : > { %v2326_v43 = vcombine.low %v2318_v63, %v2319_v38  ;;  %v2320_v8 = vmax.f32 %v2314_v24, 0.0 }
 0x493   : > { %v2321_v48 = vmax.f32 %v2316_v7, 0.0 }
 0x494   : > { %2330 = vst [vmem:[%s267_s7] sm:$0xff] %v2326_v43 }
 0x495   : > { %v2327_v33 = vcombine.low %v2320_v8, %v2321_v48 }
 0x497   : > { %2331 = vst [vmem:[%s267_s7 + $0x8] sm:$0xff] %v2327_v33 }
 0x498   : > { %3204 = shalt.err (!%p3201_p4)
}
 0x499   : > { %s3205_s20 = scalar_lea.hbm %s4462_s13, 256  ;;  %s3209_s12 = scalar_lea.hbm %s4512_s6, 512 }
 0x49a   : > { %p3206_p7 = scmp.ne.s32.totalorder %s4462_s13, %s3205_s20  ;;  %p3210_p0 = scmp.lt.u32.totalorder %s4462_s13, %s4512_s6 }
 0x49b   : > { %p3211_p1 = scmp.lt.u32.totalorder %s3209_s12, %s3205_s20  ;;  %p3213_p6 = scmp.lt.u32.totalorder %s3205_s20, %s4462_s13 }
 0x49c   : > { %p3207_p8 = pnand %p3206_p7, %p4522_p11 }
 0x49d   : > { %p3212_p3 = por %p3211_p1, %p3210_p0 }
 0x49e   : > { %p3208_p9 = pneg %p3207_p8 }
 0x49f   : > { %p3214_p12 = por %p3213_p6, %p3212_p3 }
 0x4a1   : > { %p3215_p13 = pnand %p3214_p12, %p3208_p9 }
 0x4a3   : > { %3218 = shalt.err (!%p3215_p13)
}
 0x4a4   : > { %2534 = dma.vmem_to_hbm [thread:$0]  (%p4522_p11), %s4464_s15, 256, %s4462_s13, %s2333_s14  }
 0x4a5 PF: > { %s2359_s7 = sand.u32 1, %s3245_s21   ;;  %p4523_p5 = scmp.ne.s32.totalorder %s4517_s9, 0 }
 0x4a6   : > { %p4524_p10 = scmp.ge.s32.totalorder %s3257_s24, 2  ;;  %s2360_s28 = scalar_lea.sflag [#allocation6], %s2359_s7 }
 0x4a8   : > { %p2541_p2 = pnand %p4524_p10, %p4523_p5 }
 0x4aa   : > { %3240 = dma.done.wait (!%p2541_p2), %s2360_s28, 256  }
 0x4ab   : > { %3242 = vsyncadd (!%p2541_p2), %s2360_s28, 4294967040  ;;  %p19_p4 = scmp.ge.s32.totalorder %s3345_s27, 4   ;;  %s4525_s21 = smov %s3249_s22 }
 0x4ac   : > { %s4526_s22 = smov %s3253_s23  ;;  %s4527_s23 = smov %s3357_s30 }
 0x4ad   : > { %s4528_s24 = smov %s3345_s27  ;;  %21 = sbr.rel (!%p19_p4) target bundleno = 5 (0x5), region = 89 }
 0x4b4   :  { %2365 = vsyncpa [#allocation5], 1 }
 0x4b5   :  { %2367 = vsyncpa [#allocation5 + $0x1], 1 }
 0x4b6   :  { %2368 = vsyncpa [#allocation6], 1 }
 0x4b7   :  { %2370 = vsyncpa [#allocation6 + $0x1], 1 }

</bundles_post_ra>
